<compile_context>
chip_gen: v7x
topology: tpu7x:2x2x1
jax: 0.10.0
libtpu: 0.0.40
codegen_flags: <defaults>
</compile_context>

<pallas_src>
import functools
import math

import jax
import jax.numpy as jnp
from jax.experimental import pallas as pl
from jax.experimental.pallas import tpu as pltpu


_MAB_NAMES = ("enc0", "enc1", "dec_pma", "dec_sab1", "dec_sab2")
_NUM_MABS = len(_MAB_NAMES)


# ----------------------------------------------------------------------------
# Fused whole-network kernel (one grid step == one full set)
# ----------------------------------------------------------------------------
def set_transformer_kernel(x_ref, wqkv_ref, wo_ref, bias_ref, tail_ref, out_ref,
                           *, num_heads):
    dH = wo_ref.shape[-1]            # dim_hidden == dim_V
    d3 = 3 * dH
    ds = dH // num_heads
    num_out = out_ref.shape[1]       # num_outputs (PMA seeds)
    d_out = out_ref.shape[2]         # dim_output

    bias = bias_ref[...]             # (5, 4*dH): [bq | bk/sqrt(dV) | bv | bo] per MAB
    tail = tail_ref[...]             # (num_out + dH + 1, dH)
    seeds = tail[0:num_out, :]                             # PMA seed matrix S
    out_w = tail[num_out:num_out + dH, 0:d_out]            # final Linear weight
    out_b = tail[num_out + dH:num_out + dH + 1, 0:d_out]   # final Linear bias

    def split_heads(Xm):
        # (n, h*ds) -> (h*n, ds)  == torch.cat(X.split(ds, 1), 0)
        return jnp.concatenate(
            [Xm[:, h * ds:(h + 1) * ds] for h in range(num_heads)], axis=0)

    def merge_heads(Xm, nq):
        # (h*nq, ds) -> (nq, h*ds) == torch.cat(X.split(nq, 0), 1)
        return jnp.concatenate(
            [Xm[h * nq:(h + 1) * nq, :] for h in range(num_heads)], axis=1)

    def attend(Q, K, V):
        nq = Q.shape[0]
        Q_ = split_heads(Q)
        K_ = split_heads(K)          # K was pre-scaled by 1/sqrt(dV) at pack time
        V_ = split_heads(V)
        # Full (h*nq, h*nk) scores; softmax over ALL heads' keys (exact 2-D torch
        # semantics).  Row normalization commutes with the AV matmul, so divide after.
        S = jax.lax.dot_general(Q_, K_, (((1,), (1,)), ((), ())),
                                preferred_element_type=jnp.float32)
        S = S - jnp.max(S, axis=1, keepdims=True)
        P = jnp.exp(S)
        r = jnp.sum(P, axis=1, keepdims=True)
        AV = jnp.dot(P, V_, preferred_element_type=jnp.float32)
        O_ = Q_ + AV * pl.reciprocal(r, approx=False)       # exact (review item)
        return merge_heads(O_, nq)

    def ffn(i, O):
        H = (jnp.dot(O, wo_ref[i], preferred_element_type=jnp.float32)
             + bias[i:i + 1, d3:d3 + dH])
        return O + jnp.maximum(H, 0.0)

    def sab(i, X):
        # Fused QKV projection: one (n, d) @ (d, 3*dH) matmul, lane-dense output.
        w = wqkv_ref[i][0:X.shape[1], :]     # enc0 weight is zero-padded to dH rows
        qkv = (jnp.dot(X, w, preferred_element_type=jnp.float32)
               + bias[i:i + 1, 0:d3])
        O = attend(qkv[:, 0:dH], qkv[:, dH:2 * dH], qkv[:, 2 * dH:d3])
        return ffn(i, O)

    def pma(i, Qin, Kin):
        # Fused KV projection on the set, separate Q projection of the learned seeds.
        w = wqkv_ref[i]
        kv = (jnp.dot(Kin, w[:, dH:d3], preferred_element_type=jnp.float32)
              + bias[i:i + 1, dH:d3])
        Q = (jnp.dot(Qin, w[:, 0:dH], preferred_element_type=jnp.float32)
             + bias[i:i + 1, 0:dH])
        O = attend(Q, kv[:, 0:dH], kv[:, dH:2 * dH])
        return ffn(i, O)

    X = x_ref[0]                     # (N, dim_input)
    h = sab(0, X)                    # encoder SAB
    h = sab(1, h)                    # encoder SAB
    h = pma(2, seeds, h)             # decoder PMA(S, h)
    h = sab(3, h)                    # decoder SAB
    h = sab(4, h)                    # decoder SAB
    out_ref[0] = jnp.dot(h, out_w, preferred_element_type=jnp.float32) + out_b


# ----------------------------------------------------------------------------
# One-time parameter packing (4 DMA-friendly stacks instead of 42 tiny tensors)
# ----------------------------------------------------------------------------
def pack_params(params):
    dH = params["enc1"]["wo"].shape[0]
    scale = 1.0 / math.sqrt(dH)      # dim_V == dim_hidden; K only feeds the scores
    wqkv_l, wo_l, bias_l = [], [], []
    for name in _MAB_NAMES:
        p = params[name]
        w = jnp.concatenate([p["wq"], p["wk"] * scale, p["wv"]], axis=1)  # (d_in, 3dH)
        if w.shape[0] < dH:          # enc0: zero-pad input rows so the stack is uniform
            w = jnp.pad(w, ((0, dH - w.shape[0]), (0, 0)))
        wqkv_l.append(w)
        wo_l.append(p["wo"])
        bias_l.append(jnp.concatenate(
            [p["bq"], p["bk"] * scale, p["bv"], p["bo"]], axis=1))        # (1, 4dH)

    num_out = params["pma_S"].shape[0]
    d_out = params["out_w"].shape[1]
    tail = jnp.zeros((num_out + dH + 1, dH), jnp.float32)
    tail = tail.at[0:num_out, :].set(params["pma_S"])
    tail = tail.at[num_out:num_out + dH, 0:d_out].set(params["out_w"])
    tail = tail.at[num_out + dH, 0:d_out].set(params["out_b"][0])

    return {
        "wqkv": jnp.stack(wqkv_l, axis=0),        # (5, dH, 3*dH)
        "wo": jnp.stack(wo_l, axis=0),            # (5, dH, dH)
        "bias": jnp.concatenate(bias_l, axis=0),  # (5, 4*dH)
        "tail": tail,                             # (num_out + dH + 1, dH)
    }


# ----------------------------------------------------------------------------
# Wrapper
# ----------------------------------------------------------------------------
@functools.partial(jax.jit,
                   static_argnames=("num_heads", "num_outputs", "dim_output"))
def set_transformer_forward(X, packed, *, num_heads, num_outputs, dim_output):
    squeeze = X.ndim == 2
    if squeeze:
        X = X[None]
    B, N, d_in = X.shape
    wqkv, wo, bias, tail = packed["wqkv"], packed["wo"], packed["bias"], packed["tail"]
    dH = wo.shape[-1]
    ds = dH // num_heads

    # Advisory cost estimate (helps XLA schedule around the custom call).
    def attn_flops(nq, nk):
        return 4 * (num_heads * nq) * (num_heads * nk) * ds
    flops_one = (
        2 * N * d_in * 3 * dH + attn_flops(N, N) + 2 * N * dH * dH            # enc SAB0
        + 2 * N * dH * 3 * dH + attn_flops(N, N) + 2 * N * dH * dH            # enc SAB1
        + 2 * N * dH * 2 * dH + 2 * num_outputs * dH * dH
        + attn_flops(num_outputs, N) + 2 * num_outputs * dH * dH              # dec PMA
        + 2 * (2 * num_outputs * dH * 3 * dH + attn_flops(num_outputs, num_outputs)
               + 2 * num_outputs * dH * dH)                                   # dec SABs
        + 2 * num_outputs * dH * dim_output)                                  # Linear
    trans_one = (2 * (num_heads * N) ** 2
                 + (num_heads * num_outputs) * (num_heads * N)
                 + 2 * (num_heads * num_outputs) ** 2)
    bytes_accessed = 4 * (X.size + wqkv.size + wo.size + bias.size + tail.size
                          + B * num_outputs * dim_output)

    out = pl.pallas_call(
        functools.partial(set_transformer_kernel, num_heads=num_heads),
        out_shape=jax.ShapeDtypeStruct((B, num_outputs, dim_output), jnp.float32),
        grid=(B,),
        in_specs=[
            pl.BlockSpec((1, N, d_in), lambda b: (b, 0, 0)),       # one set per step
            pl.BlockSpec(wqkv.shape, lambda b: (0, 0, 0)),         # weights resident
            pl.BlockSpec(wo.shape, lambda b: (0, 0, 0)),
            pl.BlockSpec(bias.shape, lambda b: (0, 0)),
            pl.BlockSpec(tail.shape, lambda b: (0, 0)),
        ],
        out_specs=pl.BlockSpec((1, num_outputs, dim_output), lambda b: (b, 0, 0)),
        compiler_params=pltpu.CompilerParams(dimension_semantics=("parallel",)),
        cost_estimate=pl.CostEstimate(flops=int(B * flops_one),
                                      transcendentals=int(B * trans_one),
                                      bytes_accessed=int(bytes_accessed)),
    )(X, wqkv, wo, bias, tail)
    return jnp.squeeze(out) if squeeze else out


# ----------------------------------------------------------------------------
# Deterministic parameter initialization
# ----------------------------------------------------------------------------
def init_linear(key, d_in, d_out):
    kw, kb = jax.random.split(key)
    w = jax.random.normal(kw, (d_in, d_out), jnp.float32) / math.sqrt(d_in)
    b = 0.01 * jax.random.normal(kb, (1, d_out), jnp.float32)
    return w, b


def init_mab(key, dQ, dK, dV):
    ks = jax.random.split(key, 4)
    wq, bq = init_linear(ks[0], dQ, dV)
    wk, bk = init_linear(ks[1], dK, dV)
    wv, bv = init_linear(ks[2], dK, dV)
    wo, bo = init_linear(ks[3], dV, dV)
    return dict(wq=wq, bq=bq, wk=wk, bk=bk, wv=wv, bv=bv, wo=wo, bo=bo)


def init_set_transformer(key, dim_input, num_outputs, dim_output,
                         dim_hidden, num_heads):
    ks = jax.random.split(key, 7)
    params = {
        "enc0": init_mab(ks[0], dim_input, dim_input, dim_hidden),
        "enc1": init_mab(ks[1], dim_hidden, dim_hidden, dim_hidden),
        "pma_S": (jax.random.normal(ks[2], (num_outputs, dim_hidden), jnp.float32)
                  * math.sqrt(2.0 / (num_outputs + dim_hidden))),  # xavier-like
        "dec_pma": init_mab(ks[3], dim_hidden, dim_hidden, dim_hidden),
        "dec_sab1": init_mab(ks[4], dim_hidden, dim_hidden, dim_hidden),
        "dec_sab2": init_mab(ks[5], dim_hidden, dim_hidden, dim_hidden),
    }
    params["out_w"], params["out_b"] = init_linear(ks[6], dim_hidden, dim_output)
    return params


# ----------------------------------------------------------------------------
# Pure-JAX reference (mirrors the torch code exactly) for correctness checking
# ----------------------------------------------------------------------------
def mab_ref(Qin, Kin, p, num_heads):
    dV = p["wo"].shape[0]
    Q = Qin @ p["wq"] + p["bq"]
    K = Kin @ p["wk"] + p["bk"]
    V = Kin @ p["wv"] + p["bv"]
    Q_ = jnp.concatenate(jnp.split(Q, num_heads, axis=1), axis=0)
    K_ = jnp.concatenate(jnp.split(K, num_heads, axis=1), axis=0)
    V_ = jnp.concatenate(jnp.split(V, num_heads, axis=1), axis=0)
    A = jax.nn.softmax(Q_ @ K_.T / math.sqrt(dV), axis=1)
    O_ = Q_ + A @ V_
    O = jnp.concatenate(jnp.split(O_, num_heads, axis=0), axis=1)
    return O + jax.nn.relu(O @ p["wo"] + p["bo"])


def set_transformer_ref(X, params, num_heads):
    x = mab_ref(X, X, params["enc0"], num_heads)
    x = mab_ref(x, x, params["enc1"], num_heads)
    x = mab_ref(params["pma_S"], x, params["dec_pma"], num_heads)
    x = mab_ref(x, x, params["dec_sab1"], num_heads)
    x = mab_ref(x, x, params["dec_sab2"], num_heads)
    return jnp.squeeze(x @ params["out_w"] + params["out_b"])


# ----------------------------------------------------------------------------
if __name__ == "__main__":
    dim_input, num_outputs, dim_output = 4, 8, 4
    dim_hidden, num_heads = 32, 4
    N, B = 8, 2          # set size, number of sets

    key = jax.random.PRNGKey(0)
    k_x, k_p = jax.random.split(key)
    X = jax.random.normal(k_x, (B, N, dim_input), jnp.float32)
    params = init_set_transformer(k_p, dim_input, num_outputs, dim_output,
                                  dim_hidden, num_heads)
    packed = pack_params(params)     # one-time packing (not part of the fwd pass)

    fwd = functools.partial(set_transformer_forward, num_heads=num_heads,
                            num_outputs=num_outputs, dim_output=dim_output)

    # Batched path: grid=(B,) "parallel" axis, weights stay VMEM-resident.
    out = jax.block_until_ready(fwd(X, packed))
    assert out.shape == (B, num_outputs, dim_output), out.shape
    ref = jax.vmap(lambda x: set_transformer_ref(x, params, num_heads))(X)
    denom = float(jnp.maximum(jnp.max(jnp.abs(ref)), 1.0))
    err = float(jnp.max(jnp.abs(out - ref))) / denom
    assert err < 2e-4, f"batched max relative error vs reference: {err}"

    # Unbatched path: original 2-D module semantics (including trailing .squeeze()).
    out1 = jax.block_until_ready(fwd(X[0], packed))
    ref1 = set_transformer_ref(X[0], params, num_heads)
    assert out1.shape == (num_outputs, dim_output), out1.shape
    err1 = float(jnp.max(jnp.abs(out1 - ref1))) / denom
    assert err1 < 2e-4, f"unbatched max relative error vs reference: {err1}"

    print("KERNEL_OK")
</pallas_src>

<mosaic_0001>
module attributes {stable_mosaic.version = 11 : i64} {
  func.func @set_transformer_kernel(%arg0: i32, %arg1: memref<1x8x4xf32, #tpu.memory_space<vmem>>, %arg2: memref<5x32x96xf32, #tpu.memory_space<vmem>>, %arg3: memref<5x32x32xf32, #tpu.memory_space<vmem>>, %arg4: memref<5x128xf32, #tpu.memory_space<vmem>>, %arg5: memref<41x32xf32, #tpu.memory_space<vmem>>, %arg6: memref<1x8x4xf32, #tpu.memory_space<vmem>>) attributes {dimension_semantics = [#tpu.dimension_semantics<parallel>], iteration_bounds = array<i64: 2>, scalar_prefetch = 0 : i64, scratch_operands = 0 : i64, tpu.core_type = #tpu.core_type<tc>, window_params = [{transform_indices = @transform_0, window_bounds = array<i64: 1, 8, 4>}, {pipeline_mode = #tpu.pipeline_mode<synchronous>, transform_indices = @transform_1, window_bounds = array<i64: 5, 32, 96>}, {pipeline_mode = #tpu.pipeline_mode<synchronous>, transform_indices = @transform_2, window_bounds = array<i64: 5, 32, 32>}, {pipeline_mode = #tpu.pipeline_mode<synchronous>, transform_indices = @transform_3, window_bounds = array<i64: 5, 128>}, {pipeline_mode = #tpu.pipeline_mode<synchronous>, transform_indices = @transform_4, window_bounds = array<i64: 41, 32>}, {transform_indices = @transform_5, window_bounds = array<i64: 1, 8, 4>}]} {
    %c0 = arith.constant 0 : index
    %c0_0 = arith.constant 0 : index
    %0 = vector.load %arg4[%c0, %c0_0] : memref<5x128xf32, #tpu.memory_space<vmem>>, vector<5x128xf32>
    %c0_1 = arith.constant 0 : index
    %c0_2 = arith.constant 0 : index
    %1 = vector.load %arg5[%c0_1, %c0_2] : memref<41x32xf32, #tpu.memory_space<vmem>>, vector<41x32xf32>
    %2 = vector.extract_strided_slice %1 {offsets = [0, 0], sizes = [8, 32], strides = [1, 1]} : vector<41x32xf32> to vector<8x32xf32>
    %3 = vector.extract_strided_slice %1 {offsets = [8, 0], sizes = [32, 4], strides = [1, 1]} : vector<41x32xf32> to vector<32x4xf32>
    %4 = vector.extract_strided_slice %1 {offsets = [40, 0], sizes = [1, 4], strides = [1, 1]} : vector<41x32xf32> to vector<1x4xf32>
    %c0_3 = arith.constant 0 : index
    %c0_4 = arith.constant 0 : index
    %c0_5 = arith.constant 0 : index
    %5 = vector.load %arg1[%c0_3, %c0_4, %c0_5] : memref<1x8x4xf32, #tpu.memory_space<vmem>>, vector<1x8x4xf32>
    %6 = vector.shape_cast %5 : vector<1x8x4xf32> to vector<8x4xf32>
    %c0_6 = arith.constant 0 : index
    %c0_7 = arith.constant 0 : index
    %c0_8 = arith.constant 0 : index
    %7 = vector.load %arg2[%c0_6, %c0_7, %c0_8] : memref<5x32x96xf32, #tpu.memory_space<vmem>>, vector<1x32x96xf32>
    %8 = vector.shape_cast %7 : vector<1x32x96xf32> to vector<32x96xf32>
    %9 = vector.extract_strided_slice %8 {offsets = [0, 0], sizes = [4, 96], strides = [1, 1]} : vector<32x96xf32> to vector<4x96xf32>
    %cst = arith.constant dense<0.000000e+00> : vector<8x96xf32>
    %10 = tpu.matmul %6, %9, %cst {dimension_numbers = #tpu.dot_dimension_numbers<[1], [0], [0], [1], [0, 0, 1, 1], [], []>} : vector<8x4xf32>, vector<4x96xf32>, vector<8x96xf32> -> vector<8x96xf32>
    %11 = vector.extract_strided_slice %0 {offsets = [0, 0], sizes = [1, 96], strides = [1, 1]} : vector<5x128xf32> to vector<1x96xf32>
    %12 = vector.broadcast %11 : vector<1x96xf32> to vector<8x96xf32>
    %13 = arith.addf %10, %12 : vector<8x96xf32>
    %14 = vector.extract_strided_slice %13 {offsets = [0, 0], sizes = [8, 32], strides = [1, 1]} : vector<8x96xf32> to vector<8x32xf32>
    %15 = vector.extract_strided_slice %13 {offsets = [0, 32], sizes = [8, 32], strides = [1, 1]} : vector<8x96xf32> to vector<8x32xf32>
    %16 = vector.extract_strided_slice %13 {offsets = [0, 64], sizes = [8, 32], strides = [1, 1]} : vector<8x96xf32> to vector<8x32xf32>
    %17 = vector.extract_strided_slice %14 {offsets = [0, 0], sizes = [8, 8], strides = [1, 1]} : vector<8x32xf32> to vector<8x8xf32>
    %18 = vector.extract_strided_slice %14 {offsets = [0, 8], sizes = [8, 8], strides = [1, 1]} : vector<8x32xf32> to vector<8x8xf32>
    %19 = vector.extract_strided_slice %14 {offsets = [0, 16], sizes = [8, 8], strides = [1, 1]} : vector<8x32xf32> to vector<8x8xf32>
    %20 = vector.extract_strided_slice %14 {offsets = [0, 24], sizes = [8, 8], strides = [1, 1]} : vector<8x32xf32> to vector<8x8xf32>
    %21 = tpu.concatenate %17, %18, %19, %20 in 0 : vector<8x8xf32>, vector<8x8xf32>, vector<8x8xf32>, vector<8x8xf32> -> vector<32x8xf32>
    %22 = vector.extract_strided_slice %15 {offsets = [0, 0], sizes = [8, 8], strides = [1, 1]} : vector<8x32xf32> to vector<8x8xf32>
    %23 = vector.extract_strided_slice %15 {offsets = [0, 8], sizes = [8, 8], strides = [1, 1]} : vector<8x32xf32> to vector<8x8xf32>
    %24 = vector.extract_strided_slice %15 {offsets = [0, 16], sizes = [8, 8], strides = [1, 1]} : vector<8x32xf32> to vector<8x8xf32>
    %25 = vector.extract_strided_slice %15 {offsets = [0, 24], sizes = [8, 8], strides = [1, 1]} : vector<8x32xf32> to vector<8x8xf32>
    %26 = tpu.concatenate %22, %23, %24, %25 in 0 : vector<8x8xf32>, vector<8x8xf32>, vector<8x8xf32>, vector<8x8xf32> -> vector<32x8xf32>
    %27 = vector.extract_strided_slice %16 {offsets = [0, 0], sizes = [8, 8], strides = [1, 1]} : vector<8x32xf32> to vector<8x8xf32>
    %28 = vector.extract_strided_slice %16 {offsets = [0, 8], sizes = [8, 8], strides = [1, 1]} : vector<8x32xf32> to vector<8x8xf32>
    %29 = vector.extract_strided_slice %16 {offsets = [0, 16], sizes = [8, 8], strides = [1, 1]} : vector<8x32xf32> to vector<8x8xf32>
    %30 = vector.extract_strided_slice %16 {offsets = [0, 24], sizes = [8, 8], strides = [1, 1]} : vector<8x32xf32> to vector<8x8xf32>
    %31 = tpu.concatenate %27, %28, %29, %30 in 0 : vector<8x8xf32>, vector<8x8xf32>, vector<8x8xf32>, vector<8x8xf32> -> vector<32x8xf32>
    %cst_9 = arith.constant dense<0.000000e+00> : vector<32x32xf32>
    %32 = tpu.matmul %21, %26, %cst_9 {dimension_numbers = #tpu.dot_dimension_numbers<[1], [1], [0], [0], [0, 0, 1, 0], [], []>} : vector<32x8xf32>, vector<32x8xf32>, vector<32x32xf32> -> vector<32x32xf32>
    %cst_10 = arith.constant dense<0xFF800000> : vector<32xf32>
    %33 = vector.multi_reduction <maximumf>, %32, %cst_10 [1] : vector<32x32xf32> to vector<32xf32>
    %34 = vector.shape_cast %33 : vector<32xf32> to vector<32x1xf32>
    %35 = vector.broadcast %34 : vector<32x1xf32> to vector<32x32xf32>
    %36 = arith.subf %32, %35 : vector<32x32xf32>
    %37 = math.exp %36 : vector<32x32xf32>
    %cst_11 = arith.constant dense<0.000000e+00> : vector<32xf32>
    %38 = vector.multi_reduction <add>, %37, %cst_11 [1] : vector<32x32xf32> to vector<32xf32>
    %39 = vector.shape_cast %38 : vector<32xf32> to vector<32x1xf32>
    %cst_12 = arith.constant dense<0.000000e+00> : vector<32x8xf32>
    %40 = tpu.matmul %37, %31, %cst_12 {dimension_numbers = #tpu.dot_dimension_numbers<[1], [0], [0], [1], [0, 0, 1, 1], [], []>} : vector<32x32xf32>, vector<32x8xf32>, vector<32x8xf32> -> vector<32x8xf32>
    %41 = tpu.reciprocal %39 : vector<32x1xf32> -> vector<32x1xf32>
    %42 = vector.broadcast %41 : vector<32x1xf32> to vector<32x8xf32>
    %43 = arith.mulf %40, %42 : vector<32x8xf32>
    %44 = arith.addf %21, %43 : vector<32x8xf32>
    %45 = vector.extract_strided_slice %44 {offsets = [0, 0], sizes = [8, 8], strides = [1, 1]} : vector<32x8xf32> to vector<8x8xf32>
    %46 = vector.extract_strided_slice %44 {offsets = [8, 0], sizes = [8, 8], strides = [1, 1]} : vector<32x8xf32> to vector<8x8xf32>
    %47 = vector.extract_strided_slice %44 {offsets = [16, 0], sizes = [8, 8], strides = [1, 1]} : vector<32x8xf32> to vector<8x8xf32>
    %48 = vector.extract_strided_slice %44 {offsets = [24, 0], sizes = [8, 8], strides = [1, 1]} : vector<32x8xf32> to vector<8x8xf32>
    %49 = tpu.concatenate %45, %46, %47, %48 in 1 : vector<8x8xf32>, vector<8x8xf32>, vector<8x8xf32>, vector<8x8xf32> -> vector<8x32xf32>
    %c0_13 = arith.constant 0 : index
    %c0_14 = arith.constant 0 : index
    %c0_15 = arith.constant 0 : index
    %50 = vector.load %arg3[%c0_13, %c0_14, %c0_15] : memref<5x32x32xf32, #tpu.memory_space<vmem>>, vector<1x32x32xf32>
    %51 = vector.shape_cast %50 : vector<1x32x32xf32> to vector<32x32xf32>
    %cst_16 = arith.constant dense<0.000000e+00> : vector<8x32xf32>
    %52 = tpu.matmul %49, %51, %cst_16 {dimension_numbers = #tpu.dot_dimension_numbers<[1], [0], [0], [1], [0, 0, 1, 1], [], []>} : vector<8x32xf32>, vector<32x32xf32>, vector<8x32xf32> -> vector<8x32xf32>
    %53 = vector.extract_strided_slice %0 {offsets = [0, 96], sizes = [1, 32], strides = [1, 1]} : vector<5x128xf32> to vector<1x32xf32>
    %54 = vector.broadcast %53 : vector<1x32xf32> to vector<8x32xf32>
    %55 = arith.addf %52, %54 : vector<8x32xf32>
    %cst_17 = arith.constant 0.000000e+00 : f32
    %56 = vector.broadcast %cst_17 : f32 to vector<8x32xf32>
    %57 = arith.maximumf %55, %56 : vector<8x32xf32>
    %58 = arith.addf %49, %57 : vector<8x32xf32>
    %c1 = arith.constant 1 : index
    %c0_18 = arith.constant 0 : index
    %c0_19 = arith.constant 0 : index
    %59 = vector.load %arg2[%c1, %c0_18, %c0_19] : memref<5x32x96xf32, #tpu.memory_space<vmem>>, vector<1x32x96xf32>
    %60 = vector.shape_cast %59 : vector<1x32x96xf32> to vector<32x96xf32>
    %cst_20 = arith.constant dense<0.000000e+00> : vector<8x96xf32>
    %61 = tpu.matmul %58, %60, %cst_20 {dimension_numbers = #tpu.dot_dimension_numbers<[1], [0], [0], [1], [0, 0, 1, 1], [], []>} : vector<8x32xf32>, vector<32x96xf32>, vector<8x96xf32> -> vector<8x96xf32>
    %62 = vector.extract_strided_slice %0 {offsets = [1, 0], sizes = [1, 96], strides = [1, 1]} : vector<5x128xf32> to vector<1x96xf32>
    %63 = vector.broadcast %62 : vector<1x96xf32> to vector<8x96xf32>
    %64 = arith.addf %61, %63 : vector<8x96xf32>
    %65 = vector.extract_strided_slice %64 {offsets = [0, 0], sizes = [8, 32], strides = [1, 1]} : vector<8x96xf32> to vector<8x32xf32>
    %66 = vector.extract_strided_slice %64 {offsets = [0, 32], sizes = [8, 32], strides = [1, 1]} : vector<8x96xf32> to vector<8x32xf32>
    %67 = vector.extract_strided_slice %64 {offsets = [0, 64], sizes = [8, 32], strides = [1, 1]} : vector<8x96xf32> to vector<8x32xf32>
    %68 = vector.extract_strided_slice %65 {offsets = [0, 0], sizes = [8, 8], strides = [1, 1]} : vector<8x32xf32> to vector<8x8xf32>
    %69 = vector.extract_strided_slice %65 {offsets = [0, 8], sizes = [8, 8], strides = [1, 1]} : vector<8x32xf32> to vector<8x8xf32>
    %70 = vector.extract_strided_slice %65 {offsets = [0, 16], sizes = [8, 8], strides = [1, 1]} : vector<8x32xf32> to vector<8x8xf32>
    %71 = vector.extract_strided_slice %65 {offsets = [0, 24], sizes = [8, 8], strides = [1, 1]} : vector<8x32xf32> to vector<8x8xf32>
    %72 = tpu.concatenate %68, %69, %70, %71 in 0 : vector<8x8xf32>, vector<8x8xf32>, vector<8x8xf32>, vector<8x8xf32> -> vector<32x8xf32>
    %73 = vector.extract_strided_slice %66 {offsets = [0, 0], sizes = [8, 8], strides = [1, 1]} : vector<8x32xf32> to vector<8x8xf32>
    %74 = vector.extract_strided_slice %66 {offsets = [0, 8], sizes = [8, 8], strides = [1, 1]} : vector<8x32xf32> to vector<8x8xf32>
    %75 = vector.extract_strided_slice %66 {offsets = [0, 16], sizes = [8, 8], strides = [1, 1]} : vector<8x32xf32> to vector<8x8xf32>
    %76 = vector.extract_strided_slice %66 {offsets = [0, 24], sizes = [8, 8], strides = [1, 1]} : vector<8x32xf32> to vector<8x8xf32>
    %77 = tpu.concatenate %73, %74, %75, %76 in 0 : vector<8x8xf32>, vector<8x8xf32>, vector<8x8xf32>, vector<8x8xf32> -> vector<32x8xf32>
    %78 = vector.extract_strided_slice %67 {offsets = [0, 0], sizes = [8, 8], strides = [1, 1]} : vector<8x32xf32> to vector<8x8xf32>
    %79 = vector.extract_strided_slice %67 {offsets = [0, 8], sizes = [8, 8], strides = [1, 1]} : vector<8x32xf32> to vector<8x8xf32>
    %80 = vector.extract_strided_slice %67 {offsets = [0, 16], sizes = [8, 8], strides = [1, 1]} : vector<8x32xf32> to vector<8x8xf32>
    %81 = vector.extract_strided_slice %67 {offsets = [0, 24], sizes = [8, 8], strides = [1, 1]} : vector<8x32xf32> to vector<8x8xf32>
    %82 = tpu.concatenate %78, %79, %80, %81 in 0 : vector<8x8xf32>, vector<8x8xf32>, vector<8x8xf32>, vector<8x8xf32> -> vector<32x8xf32>
    %cst_21 = arith.constant dense<0.000000e+00> : vector<32x32xf32>
    %83 = tpu.matmul %72, %77, %cst_21 {dimension_numbers = #tpu.dot_dimension_numbers<[1], [1], [0], [0], [0, 0, 1, 0], [], []>} : vector<32x8xf32>, vector<32x8xf32>, vector<32x32xf32> -> vector<32x32xf32>
    %cst_22 = arith.constant dense<0xFF800000> : vector<32xf32>
    %84 = vector.multi_reduction <maximumf>, %83, %cst_22 [1] : vector<32x32xf32> to vector<32xf32>
    %85 = vector.shape_cast %84 : vector<32xf32> to vector<32x1xf32>
    %86 = vector.broadcast %85 : vector<32x1xf32> to vector<32x32xf32>
    %87 = arith.subf %83, %86 : vector<32x32xf32>
    %88 = math.exp %87 : vector<32x32xf32>
    %cst_23 = arith.constant dense<0.000000e+00> : vector<32xf32>
    %89 = vector.multi_reduction <add>, %88, %cst_23 [1] : vector<32x32xf32> to vector<32xf32>
    %90 = vector.shape_cast %89 : vector<32xf32> to vector<32x1xf32>
    %cst_24 = arith.constant dense<0.000000e+00> : vector<32x8xf32>
    %91 = tpu.matmul %88, %82, %cst_24 {dimension_numbers = #tpu.dot_dimension_numbers<[1], [0], [0], [1], [0, 0, 1, 1], [], []>} : vector<32x32xf32>, vector<32x8xf32>, vector<32x8xf32> -> vector<32x8xf32>
    %92 = tpu.reciprocal %90 : vector<32x1xf32> -> vector<32x1xf32>
    %93 = vector.broadcast %92 : vector<32x1xf32> to vector<32x8xf32>
    %94 = arith.mulf %91, %93 : vector<32x8xf32>
    %95 = arith.addf %72, %94 : vector<32x8xf32>
    %96 = vector.extract_strided_slice %95 {offsets = [0, 0], sizes = [8, 8], strides = [1, 1]} : vector<32x8xf32> to vector<8x8xf32>
    %97 = vector.extract_strided_slice %95 {offsets = [8, 0], sizes = [8, 8], strides = [1, 1]} : vector<32x8xf32> to vector<8x8xf32>
    %98 = vector.extract_strided_slice %95 {offsets = [16, 0], sizes = [8, 8], strides = [1, 1]} : vector<32x8xf32> to vector<8x8xf32>
    %99 = vector.extract_strided_slice %95 {offsets = [24, 0], sizes = [8, 8], strides = [1, 1]} : vector<32x8xf32> to vector<8x8xf32>
    %100 = tpu.concatenate %96, %97, %98, %99 in 1 : vector<8x8xf32>, vector<8x8xf32>, vector<8x8xf32>, vector<8x8xf32> -> vector<8x32xf32>
    %c1_25 = arith.constant 1 : index
    %c0_26 = arith.constant 0 : index
    %c0_27 = arith.constant 0 : index
    %101 = vector.load %arg3[%c1_25, %c0_26, %c0_27] : memref<5x32x32xf32, #tpu.memory_space<vmem>>, vector<1x32x32xf32>
    %102 = vector.shape_cast %101 : vector<1x32x32xf32> to vector<32x32xf32>
    %cst_28 = arith.constant dense<0.000000e+00> : vector<8x32xf32>
    %103 = tpu.matmul %100, %102, %cst_28 {dimension_numbers = #tpu.dot_dimension_numbers<[1], [0], [0], [1], [0, 0, 1, 1], [], []>} : vector<8x32xf32>, vector<32x32xf32>, vector<8x32xf32> -> vector<8x32xf32>
    %104 = vector.extract_strided_slice %0 {offsets = [1, 96], sizes = [1, 32], strides = [1, 1]} : vector<5x128xf32> to vector<1x32xf32>
    %105 = vector.broadcast %104 : vector<1x32xf32> to vector<8x32xf32>
    %106 = arith.addf %103, %105 : vector<8x32xf32>
    %cst_29 = arith.constant 0.000000e+00 : f32
    %107 = vector.broadcast %cst_29 : f32 to vector<8x32xf32>
    %108 = arith.maximumf %106, %107 : vector<8x32xf32>
    %109 = arith.addf %100, %108 : vector<8x32xf32>
    %c2 = arith.constant 2 : index
    %c0_30 = arith.constant 0 : index
    %c0_31 = arith.constant 0 : index
    %110 = vector.load %arg2[%c2, %c0_30, %c0_31] : memref<5x32x96xf32, #tpu.memory_space<vmem>>, vector<1x32x96xf32>
    %111 = vector.shape_cast %110 : vector<1x32x96xf32> to vector<32x96xf32>
    %112 = vector.extract_strided_slice %111 {offsets = [0, 32], sizes = [32, 64], strides = [1, 1]} : vector<32x96xf32> to vector<32x64xf32>
    %cst_32 = arith.constant dense<0.000000e+00> : vector<8x64xf32>
    %113 = tpu.matmul %109, %112, %cst_32 {dimension_numbers = #tpu.dot_dimension_numbers<[1], [0], [0], [1], [0, 0, 1, 1], [], []>} : vector<8x32xf32>, vector<32x64xf32>, vector<8x64xf32> -> vector<8x64xf32>
    %114 = vector.extract_strided_slice %0 {offsets = [2, 32], sizes = [1, 64], strides = [1, 1]} : vector<5x128xf32> to vector<1x64xf32>
    %115 = vector.broadcast %114 : vector<1x64xf32> to vector<8x64xf32>
    %116 = arith.addf %113, %115 : vector<8x64xf32>
    %117 = vector.extract_strided_slice %111 {offsets = [0, 0], sizes = [32, 32], strides = [1, 1]} : vector<32x96xf32> to vector<32x32xf32>
    %cst_33 = arith.constant dense<0.000000e+00> : vector<8x32xf32>
    %118 = tpu.matmul %2, %117, %cst_33 {dimension_numbers = #tpu.dot_dimension_numbers<[1], [0], [0], [1], [0, 0, 1, 1], [], []>} : vector<8x32xf32>, vector<32x32xf32>, vector<8x32xf32> -> vector<8x32xf32>
    %119 = vector.extract_strided_slice %0 {offsets = [2, 0], sizes = [1, 32], strides = [1, 1]} : vector<5x128xf32> to vector<1x32xf32>
    %120 = vector.broadcast %119 : vector<1x32xf32> to vector<8x32xf32>
    %121 = arith.addf %118, %120 : vector<8x32xf32>
    %122 = vector.extract_strided_slice %116 {offsets = [0, 0], sizes = [8, 32], strides = [1, 1]} : vector<8x64xf32> to vector<8x32xf32>
    %123 = vector.extract_strided_slice %116 {offsets = [0, 32], sizes = [8, 32], strides = [1, 1]} : vector<8x64xf32> to vector<8x32xf32>
    %124 = vector.extract_strided_slice %121 {offsets = [0, 0], sizes = [8, 8], strides = [1, 1]} : vector<8x32xf32> to vector<8x8xf32>
    %125 = vector.extract_strided_slice %121 {offsets = [0, 8], sizes = [8, 8], strides = [1, 1]} : vector<8x32xf32> to vector<8x8xf32>
    %126 = vector.extract_strided_slice %121 {offsets = [0, 16], sizes = [8, 8], strides = [1, 1]} : vector<8x32xf32> to vector<8x8xf32>
    %127 = vector.extract_strided_slice %121 {offsets = [0, 24], sizes = [8, 8], strides = [1, 1]} : vector<8x32xf32> to vector<8x8xf32>
    %128 = tpu.concatenate %124, %125, %126, %127 in 0 : vector<8x8xf32>, vector<8x8xf32>, vector<8x8xf32>, vector<8x8xf32> -> vector<32x8xf32>
    %129 = vector.extract_strided_slice %122 {offsets = [0, 0], sizes = [8, 8], strides = [1, 1]} : vector<8x32xf32> to vector<8x8xf32>
    %130 = vector.extract_strided_slice %122 {offsets = [0, 8], sizes = [8, 8], strides = [1, 1]} : vector<8x32xf32> to vector<8x8xf32>
    %131 = vector.extract_strided_slice %122 {offsets = [0, 16], sizes = [8, 8], strides = [1, 1]} : vector<8x32xf32> to vector<8x8xf32>
    %132 = vector.extract_strided_slice %122 {offsets = [0, 24], sizes = [8, 8], strides = [1, 1]} : vector<8x32xf32> to vector<8x8xf32>
    %133 = tpu.concatenate %129, %130, %131, %132 in 0 : vector<8x8xf32>, vector<8x8xf32>, vector<8x8xf32>, vector<8x8xf32> -> vector<32x8xf32>
    %134 = vector.extract_strided_slice %123 {offsets = [0, 0], sizes = [8, 8], strides = [1, 1]} : vector<8x32xf32> to vector<8x8xf32>
    %135 = vector.extract_strided_slice %123 {offsets = [0, 8], sizes = [8, 8], strides = [1, 1]} : vector<8x32xf32> to vector<8x8xf32>
    %136 = vector.extract_strided_slice %123 {offsets = [0, 16], sizes = [8, 8], strides = [1, 1]} : vector<8x32xf32> to vector<8x8xf32>
    %137 = vector.extract_strided_slice %123 {offsets = [0, 24], sizes = [8, 8], strides = [1, 1]} : vector<8x32xf32> to vector<8x8xf32>
    %138 = tpu.concatenate %134, %135, %136, %137 in 0 : vector<8x8xf32>, vector<8x8xf32>, vector<8x8xf32>, vector<8x8xf32> -> vector<32x8xf32>
    %cst_34 = arith.constant dense<0.000000e+00> : vector<32x32xf32>
    %139 = tpu.matmul %128, %133, %cst_34 {dimension_numbers = #tpu.dot_dimension_numbers<[1], [1], [0], [0], [0, 0, 1, 0], [], []>} : vector<32x8xf32>, vector<32x8xf32>, vector<32x32xf32> -> vector<32x32xf32>
    %cst_35 = arith.constant dense<0xFF800000> : vector<32xf32>
    %140 = vector.multi_reduction <maximumf>, %139, %cst_35 [1] : vector<32x32xf32> to vector<32xf32>
    %141 = vector.shape_cast %140 : vector<32xf32> to vector<32x1xf32>
    %142 = vector.broadcast %141 : vector<32x1xf32> to vector<32x32xf32>
    %143 = arith.subf %139, %142 : vector<32x32xf32>
    %144 = math.exp %143 : vector<32x32xf32>
    %cst_36 = arith.constant dense<0.000000e+00> : vector<32xf32>
    %145 = vector.multi_reduction <add>, %144, %cst_36 [1] : vector<32x32xf32> to vector<32xf32>
    %146 = vector.shape_cast %145 : vector<32xf32> to vector<32x1xf32>
    %cst_37 = arith.constant dense<0.000000e+00> : vector<32x8xf32>
    %147 = tpu.matmul %144, %138, %cst_37 {dimension_numbers = #tpu.dot_dimension_numbers<[1], [0], [0], [1], [0, 0, 1, 1], [], []>} : vector<32x32xf32>, vector<32x8xf32>, vector<32x8xf32> -> vector<32x8xf32>
    %148 = tpu.reciprocal %146 : vector<32x1xf32> -> vector<32x1xf32>
    %149 = vector.broadcast %148 : vector<32x1xf32> to vector<32x8xf32>
    %150 = arith.mulf %147, %149 : vector<32x8xf32>
    %151 = arith.addf %128, %150 : vector<32x8xf32>
    %152 = vector.extract_strided_slice %151 {offsets = [0, 0], sizes = [8, 8], strides = [1, 1]} : vector<32x8xf32> to vector<8x8xf32>
    %153 = vector.extract_strided_slice %151 {offsets = [8, 0], sizes = [8, 8], strides = [1, 1]} : vector<32x8xf32> to vector<8x8xf32>
    %154 = vector.extract_strided_slice %151 {offsets = [16, 0], sizes = [8, 8], strides = [1, 1]} : vector<32x8xf32> to vector<8x8xf32>
    %155 = vector.extract_strided_slice %151 {offsets = [24, 0], sizes = [8, 8], strides = [1, 1]} : vector<32x8xf32> to vector<8x8xf32>
    %156 = tpu.concatenate %152, %153, %154, %155 in 1 : vector<8x8xf32>, vector<8x8xf32>, vector<8x8xf32>, vector<8x8xf32> -> vector<8x32xf32>
    %c2_38 = arith.constant 2 : index
    %c0_39 = arith.constant 0 : index
    %c0_40 = arith.constant 0 : index
    %157 = vector.load %arg3[%c2_38, %c0_39, %c0_40] : memref<5x32x32xf32, #tpu.memory_space<vmem>>, vector<1x32x32xf32>
    %158 = vector.shape_cast %157 : vector<1x32x32xf32> to vector<32x32xf32>
    %cst_41 = arith.constant dense<0.000000e+00> : vector<8x32xf32>
    %159 = tpu.matmul %156, %158, %cst_41 {dimension_numbers = #tpu.dot_dimension_numbers<[1], [0], [0], [1], [0, 0, 1, 1], [], []>} : vector<8x32xf32>, vector<32x32xf32>, vector<8x32xf32> -> vector<8x32xf32>
    %160 = vector.extract_strided_slice %0 {offsets = [2, 96], sizes = [1, 32], strides = [1, 1]} : vector<5x128xf32> to vector<1x32xf32>
    %161 = vector.broadcast %160 : vector<1x32xf32> to vector<8x32xf32>
    %162 = arith.addf %159, %161 : vector<8x32xf32>
    %cst_42 = arith.constant 0.000000e+00 : f32
    %163 = vector.broadcast %cst_42 : f32 to vector<8x32xf32>
    %164 = arith.maximumf %162, %163 : vector<8x32xf32>
    %165 = arith.addf %156, %164 : vector<8x32xf32>
    %c3 = arith.constant 3 : index
    %c0_43 = arith.constant 0 : index
    %c0_44 = arith.constant 0 : index
    %166 = vector.load %arg2[%c3, %c0_43, %c0_44] : memref<5x32x96xf32, #tpu.memory_space<vmem>>, vector<1x32x96xf32>
    %167 = vector.shape_cast %166 : vector<1x32x96xf32> to vector<32x96xf32>
    %cst_45 = arith.constant dense<0.000000e+00> : vector<8x96xf32>
    %168 = tpu.matmul %165, %167, %cst_45 {dimension_numbers = #tpu.dot_dimension_numbers<[1], [0], [0], [1], [0, 0, 1, 1], [], []>} : vector<8x32xf32>, vector<32x96xf32>, vector<8x96xf32> -> vector<8x96xf32>
    %169 = vector.extract_strided_slice %0 {offsets = [3, 0], sizes = [1, 96], strides = [1, 1]} : vector<5x128xf32> to vector<1x96xf32>
    %170 = vector.broadcast %169 : vector<1x96xf32> to vector<8x96xf32>
    %171 = arith.addf %168, %170 : vector<8x96xf32>
    %172 = vector.extract_strided_slice %171 {offsets = [0, 0], sizes = [8, 32], strides = [1, 1]} : vector<8x96xf32> to vector<8x32xf32>
    %173 = vector.extract_strided_slice %171 {offsets = [0, 32], sizes = [8, 32], strides = [1, 1]} : vector<8x96xf32> to vector<8x32xf32>
    %174 = vector.extract_strided_slice %171 {offsets = [0, 64], sizes = [8, 32], strides = [1, 1]} : vector<8x96xf32> to vector<8x32xf32>
    %175 = vector.extract_strided_slice %172 {offsets = [0, 0], sizes = [8, 8], strides = [1, 1]} : vector<8x32xf32> to vector<8x8xf32>
    %176 = vector.extract_strided_slice %172 {offsets = [0, 8], sizes = [8, 8], strides = [1, 1]} : vector<8x32xf32> to vector<8x8xf32>
    %177 = vector.extract_strided_slice %172 {offsets = [0, 16], sizes = [8, 8], strides = [1, 1]} : vector<8x32xf32> to vector<8x8xf32>
    %178 = vector.extract_strided_slice %172 {offsets = [0, 24], sizes = [8, 8], strides = [1, 1]} : vector<8x32xf32> to vector<8x8xf32>
    %179 = tpu.concatenate %175, %176, %177, %178 in 0 : vector<8x8xf32>, vector<8x8xf32>, vector<8x8xf32>, vector<8x8xf32> -> vector<32x8xf32>
    %180 = vector.extract_strided_slice %173 {offsets = [0, 0], sizes = [8, 8], strides = [1, 1]} : vector<8x32xf32> to vector<8x8xf32>
    %181 = vector.extract_strided_slice %173 {offsets = [0, 8], sizes = [8, 8], strides = [1, 1]} : vector<8x32xf32> to vector<8x8xf32>
    %182 = vector.extract_strided_slice %173 {offsets = [0, 16], sizes = [8, 8], strides = [1, 1]} : vector<8x32xf32> to vector<8x8xf32>
    %183 = vector.extract_strided_slice %173 {offsets = [0, 24], sizes = [8, 8], strides = [1, 1]} : vector<8x32xf32> to vector<8x8xf32>
    %184 = tpu.concatenate %180, %181, %182, %183 in 0 : vector<8x8xf32>, vector<8x8xf32>, vector<8x8xf32>, vector<8x8xf32> -> vector<32x8xf32>
    %185 = vector.extract_strided_slice %174 {offsets = [0, 0], sizes = [8, 8], strides = [1, 1]} : vector<8x32xf32> to vector<8x8xf32>
    %186 = vector.extract_strided_slice %174 {offsets = [0, 8], sizes = [8, 8], strides = [1, 1]} : vector<8x32xf32> to vector<8x8xf32>
    %187 = vector.extract_strided_slice %174 {offsets = [0, 16], sizes = [8, 8], strides = [1, 1]} : vector<8x32xf32> to vector<8x8xf32>
    %188 = vector.extract_strided_slice %174 {offsets = [0, 24], sizes = [8, 8], strides = [1, 1]} : vector<8x32xf32> to vector<8x8xf32>
    %189 = tpu.concatenate %185, %186, %187, %188 in 0 : vector<8x8xf32>, vector<8x8xf32>, vector<8x8xf32>, vector<8x8xf32> -> vector<32x8xf32>
    %cst_46 = arith.constant dense<0.000000e+00> : vector<32x32xf32>
    %190 = tpu.matmul %179, %184, %cst_46 {dimension_numbers = #tpu.dot_dimension_numbers<[1], [1], [0], [0], [0, 0, 1, 0], [], []>} : vector<32x8xf32>, vector<32x8xf32>, vector<32x32xf32> -> vector<32x32xf32>
    %cst_47 = arith.constant dense<0xFF800000> : vector<32xf32>
    %191 = vector.multi_reduction <maximumf>, %190, %cst_47 [1] : vector<32x32xf32> to vector<32xf32>
    %192 = vector.shape_cast %191 : vector<32xf32> to vector<32x1xf32>
    %193 = vector.broadcast %192 : vector<32x1xf32> to vector<32x32xf32>
    %194 = arith.subf %190, %193 : vector<32x32xf32>
    %195 = math.exp %194 : vector<32x32xf32>
    %cst_48 = arith.constant dense<0.000000e+00> : vector<32xf32>
    %196 = vector.multi_reduction <add>, %195, %cst_48 [1] : vector<32x32xf32> to vector<32xf32>
    %197 = vector.shape_cast %196 : vector<32xf32> to vector<32x1xf32>
    %cst_49 = arith.constant dense<0.000000e+00> : vector<32x8xf32>
    %198 = tpu.matmul %195, %189, %cst_49 {dimension_numbers = #tpu.dot_dimension_numbers<[1], [0], [0], [1], [0, 0, 1, 1], [], []>} : vector<32x32xf32>, vector<32x8xf32>, vector<32x8xf32> -> vector<32x8xf32>
    %199 = tpu.reciprocal %197 : vector<32x1xf32> -> vector<32x1xf32>
    %200 = vector.broadcast %199 : vector<32x1xf32> to vector<32x8xf32>
    %201 = arith.mulf %198, %200 : vector<32x8xf32>
    %202 = arith.addf %179, %201 : vector<32x8xf32>
    %203 = vector.extract_strided_slice %202 {offsets = [0, 0], sizes = [8, 8], strides = [1, 1]} : vector<32x8xf32> to vector<8x8xf32>
    %204 = vector.extract_strided_slice %202 {offsets = [8, 0], sizes = [8, 8], strides = [1, 1]} : vector<32x8xf32> to vector<8x8xf32>
    %205 = vector.extract_strided_slice %202 {offsets = [16, 0], sizes = [8, 8], strides = [1, 1]} : vector<32x8xf32> to vector<8x8xf32>
    %206 = vector.extract_strided_slice %202 {offsets = [24, 0], sizes = [8, 8], strides = [1, 1]} : vector<32x8xf32> to vector<8x8xf32>
    %207 = tpu.concatenate %203, %204, %205, %206 in 1 : vector<8x8xf32>, vector<8x8xf32>, vector<8x8xf32>, vector<8x8xf32> -> vector<8x32xf32>
    %c3_50 = arith.constant 3 : index
    %c0_51 = arith.constant 0 : index
    %c0_52 = arith.constant 0 : index
    %208 = vector.load %arg3[%c3_50, %c0_51, %c0_52] : memref<5x32x32xf32, #tpu.memory_space<vmem>>, vector<1x32x32xf32>
    %209 = vector.shape_cast %208 : vector<1x32x32xf32> to vector<32x32xf32>
    %cst_53 = arith.constant dense<0.000000e+00> : vector<8x32xf32>
    %210 = tpu.matmul %207, %209, %cst_53 {dimension_numbers = #tpu.dot_dimension_numbers<[1], [0], [0], [1], [0, 0, 1, 1], [], []>} : vector<8x32xf32>, vector<32x32xf32>, vector<8x32xf32> -> vector<8x32xf32>
    %211 = vector.extract_strided_slice %0 {offsets = [3, 96], sizes = [1, 32], strides = [1, 1]} : vector<5x128xf32> to vector<1x32xf32>
    %212 = vector.broadcast %211 : vector<1x32xf32> to vector<8x32xf32>
    %213 = arith.addf %210, %212 : vector<8x32xf32>
    %cst_54 = arith.constant 0.000000e+00 : f32
    %214 = vector.broadcast %cst_54 : f32 to vector<8x32xf32>
    %215 = arith.maximumf %213, %214 : vector<8x32xf32>
    %216 = arith.addf %207, %215 : vector<8x32xf32>
    %c4 = arith.constant 4 : index
    %c0_55 = arith.constant 0 : index
    %c0_56 = arith.constant 0 : index
    %217 = vector.load %arg2[%c4, %c0_55, %c0_56] : memref<5x32x96xf32, #tpu.memory_space<vmem>>, vector<1x32x96xf32>
    %218 = vector.shape_cast %217 : vector<1x32x96xf32> to vector<32x96xf32>
    %cst_57 = arith.constant dense<0.000000e+00> : vector<8x96xf32>
    %219 = tpu.matmul %216, %218, %cst_57 {dimension_numbers = #tpu.dot_dimension_numbers<[1], [0], [0], [1], [0, 0, 1, 1], [], []>} : vector<8x32xf32>, vector<32x96xf32>, vector<8x96xf32> -> vector<8x96xf32>
    %220 = vector.extract_strided_slice %0 {offsets = [4, 0], sizes = [1, 96], strides = [1, 1]} : vector<5x128xf32> to vector<1x96xf32>
    %221 = vector.broadcast %220 : vector<1x96xf32> to vector<8x96xf32>
    %222 = arith.addf %219, %221 : vector<8x96xf32>
    %223 = vector.extract_strided_slice %222 {offsets = [0, 0], sizes = [8, 32], strides = [1, 1]} : vector<8x96xf32> to vector<8x32xf32>
    %224 = vector.extract_strided_slice %222 {offsets = [0, 32], sizes = [8, 32], strides = [1, 1]} : vector<8x96xf32> to vector<8x32xf32>
    %225 = vector.extract_strided_slice %222 {offsets = [0, 64], sizes = [8, 32], strides = [1, 1]} : vector<8x96xf32> to vector<8x32xf32>
    %226 = vector.extract_strided_slice %223 {offsets = [0, 0], sizes = [8, 8], strides = [1, 1]} : vector<8x32xf32> to vector<8x8xf32>
    %227 = vector.extract_strided_slice %223 {offsets = [0, 8], sizes = [8, 8], strides = [1, 1]} : vector<8x32xf32> to vector<8x8xf32>
    %228 = vector.extract_strided_slice %223 {offsets = [0, 16], sizes = [8, 8], strides = [1, 1]} : vector<8x32xf32> to vector<8x8xf32>
    %229 = vector.extract_strided_slice %223 {offsets = [0, 24], sizes = [8, 8], strides = [1, 1]} : vector<8x32xf32> to vector<8x8xf32>
    %230 = tpu.concatenate %226, %227, %228, %229 in 0 : vector<8x8xf32>, vector<8x8xf32>, vector<8x8xf32>, vector<8x8xf32> -> vector<32x8xf32>
    %231 = vector.extract_strided_slice %224 {offsets = [0, 0], sizes = [8, 8], strides = [1, 1]} : vector<8x32xf32> to vector<8x8xf32>
    %232 = vector.extract_strided_slice %224 {offsets = [0, 8], sizes = [8, 8], strides = [1, 1]} : vector<8x32xf32> to vector<8x8xf32>
    %233 = vector.extract_strided_slice %224 {offsets = [0, 16], sizes = [8, 8], strides = [1, 1]} : vector<8x32xf32> to vector<8x8xf32>
    %234 = vector.extract_strided_slice %224 {offsets = [0, 24], sizes = [8, 8], strides = [1, 1]} : vector<8x32xf32> to vector<8x8xf32>
    %235 = tpu.concatenate %231, %232, %233, %234 in 0 : vector<8x8xf32>, vector<8x8xf32>, vector<8x8xf32>, vector<8x8xf32> -> vector<32x8xf32>
    %236 = vector.extract_strided_slice %225 {offsets = [0, 0], sizes = [8, 8], strides = [1, 1]} : vector<8x32xf32> to vector<8x8xf32>
    %237 = vector.extract_strided_slice %225 {offsets = [0, 8], sizes = [8, 8], strides = [1, 1]} : vector<8x32xf32> to vector<8x8xf32>
    %238 = vector.extract_strided_slice %225 {offsets = [0, 16], sizes = [8, 8], strides = [1, 1]} : vector<8x32xf32> to vector<8x8xf32>
    %239 = vector.extract_strided_slice %225 {offsets = [0, 24], sizes = [8, 8], strides = [1, 1]} : vector<8x32xf32> to vector<8x8xf32>
    %240 = tpu.concatenate %236, %237, %238, %239 in 0 : vector<8x8xf32>, vector<8x8xf32>, vector<8x8xf32>, vector<8x8xf32> -> vector<32x8xf32>
    %cst_58 = arith.constant dense<0.000000e+00> : vector<32x32xf32>
    %241 = tpu.matmul %230, %235, %cst_58 {dimension_numbers = #tpu.dot_dimension_numbers<[1], [1], [0], [0], [0, 0, 1, 0], [], []>} : vector<32x8xf32>, vector<32x8xf32>, vector<32x32xf32> -> vector<32x32xf32>
    %cst_59 = arith.constant dense<0xFF800000> : vector<32xf32>
    %242 = vector.multi_reduction <maximumf>, %241, %cst_59 [1] : vector<32x32xf32> to vector<32xf32>
    %243 = vector.shape_cast %242 : vector<32xf32> to vector<32x1xf32>
    %244 = vector.broadcast %243 : vector<32x1xf32> to vector<32x32xf32>
    %245 = arith.subf %241, %244 : vector<32x32xf32>
    %246 = math.exp %245 : vector<32x32xf32>
    %cst_60 = arith.constant dense<0.000000e+00> : vector<32xf32>
    %247 = vector.multi_reduction <add>, %246, %cst_60 [1] : vector<32x32xf32> to vector<32xf32>
    %248 = vector.shape_cast %247 : vector<32xf32> to vector<32x1xf32>
    %cst_61 = arith.constant dense<0.000000e+00> : vector<32x8xf32>
    %249 = tpu.matmul %246, %240, %cst_61 {dimension_numbers = #tpu.dot_dimension_numbers<[1], [0], [0], [1], [0, 0, 1, 1], [], []>} : vector<32x32xf32>, vector<32x8xf32>, vector<32x8xf32> -> vector<32x8xf32>
    %250 = tpu.reciprocal %248 : vector<32x1xf32> -> vector<32x1xf32>
    %251 = vector.broadcast %250 : vector<32x1xf32> to vector<32x8xf32>
    %252 = arith.mulf %249, %251 : vector<32x8xf32>
    %253 = arith.addf %230, %252 : vector<32x8xf32>
    %254 = vector.extract_strided_slice %253 {offsets = [0, 0], sizes = [8, 8], strides = [1, 1]} : vector<32x8xf32> to vector<8x8xf32>
    %255 = vector.extract_strided_slice %253 {offsets = [8, 0], sizes = [8, 8], strides = [1, 1]} : vector<32x8xf32> to vector<8x8xf32>
    %256 = vector.extract_strided_slice %253 {offsets = [16, 0], sizes = [8, 8], strides = [1, 1]} : vector<32x8xf32> to vector<8x8xf32>
    %257 = vector.extract_strided_slice %253 {offsets = [24, 0], sizes = [8, 8], strides = [1, 1]} : vector<32x8xf32> to vector<8x8xf32>
    %258 = tpu.concatenate %254, %255, %256, %257 in 1 : vector<8x8xf32>, vector<8x8xf32>, vector<8x8xf32>, vector<8x8xf32> -> vector<8x32xf32>
    %c4_62 = arith.constant 4 : index
    %c0_63 = arith.constant 0 : index
    %c0_64 = arith.constant 0 : index
    %259 = vector.load %arg3[%c4_62, %c0_63, %c0_64] : memref<5x32x32xf32, #tpu.memory_space<vmem>>, vector<1x32x32xf32>
    %260 = vector.shape_cast %259 : vector<1x32x32xf32> to vector<32x32xf32>
    %cst_65 = arith.constant dense<0.000000e+00> : vector<8x32xf32>
    %261 = tpu.matmul %258, %260, %cst_65 {dimension_numbers = #tpu.dot_dimension_numbers<[1], [0], [0], [1], [0, 0, 1, 1], [], []>} : vector<8x32xf32>, vector<32x32xf32>, vector<8x32xf32> -> vector<8x32xf32>
    %262 = vector.extract_strided_slice %0 {offsets = [4, 96], sizes = [1, 32], strides = [1, 1]} : vector<5x128xf32> to vector<1x32xf32>
    %263 = vector.broadcast %262 : vector<1x32xf32> to vector<8x32xf32>
    %264 = arith.addf %261, %263 : vector<8x32xf32>
    %cst_66 = arith.constant 0.000000e+00 : f32
    %265 = vector.broadcast %cst_66 : f32 to vector<8x32xf32>
    %266 = arith.maximumf %264, %265 : vector<8x32xf32>
    %267 = arith.addf %258, %266 : vector<8x32xf32>
    %cst_67 = arith.constant dense<0.000000e+00> : vector<8x4xf32>
    %268 = tpu.matmul %267, %3, %cst_67 {dimension_numbers = #tpu.dot_dimension_numbers<[1], [0], [0], [1], [0, 0, 1, 1], [], []>} : vector<8x32xf32>, vector<32x4xf32>, vector<8x4xf32> -> vector<8x4xf32>
    %269 = vector.broadcast %4 : vector<1x4xf32> to vector<8x4xf32>
    %270 = arith.addf %268, %269 : vector<8x4xf32>
    %c0_68 = arith.constant 0 : index
    %c0_69 = arith.constant 0 : index
    %c0_70 = arith.constant 0 : index
    %271 = vector.load %arg6[%c0_68, %c0_69, %c0_70] : memref<1x8x4xf32, #tpu.memory_space<vmem>>, vector<1x8x4xf32>
    %272 = vector.shape_cast %271 : vector<1x8x4xf32> to vector<8x4xf32>
    %273 = vector.shape_cast %270 : vector<8x4xf32> to vector<1x8x4xf32>
    tpu.vector_store %arg6[%c0_68, %c0_69, %c0_70], %273 {strides = array<i32>} : memref<1x8x4xf32, #tpu.memory_space<vmem>>, vector<1x8x4xf32>,
    return
  }
  func.func @transform_0(%arg0: i32) -> (i32, i32, i32) {
    %c0_i32 = arith.constant 0 : i32
    %c0_i32_0 = arith.constant 0 : i32
    %c0_i32_1 = arith.constant 0 : i32
    return %arg0, %c0_i32, %c0_i32_0 : i32, i32, i32
  }
  func.func @transform_1(%arg0: i32) -> (i32, i32, i32) {
    %c0_i32 = arith.constant 0 : i32
    %c0_i32_0 = arith.constant 0 : i32
    %c0_i32_1 = arith.constant 0 : i32
    %c0_i32_2 = arith.constant 0 : i32
    return %c0_i32, %c0_i32_0, %c0_i32_1 : i32, i32, i32
  }
  func.func @transform_2(%arg0: i32) -> (i32, i32, i32) {
    %c0_i32 = arith.constant 0 : i32
    %c0_i32_0 = arith.constant 0 : i32
    %c0_i32_1 = arith.constant 0 : i32
    %c0_i32_2 = arith.constant 0 : i32
    return %c0_i32, %c0_i32_0, %c0_i32_1 : i32, i32, i32
  }
  func.func @transform_3(%arg0: i32) -> (i32, i32) {
    %c0_i32 = arith.constant 0 : i32
    %c0_i32_0 = arith.constant 0 : i32
    %c0_i32_1 = arith.constant 0 : i32
    return %c0_i32, %c0_i32_0 : i32, i32
  }
  func.func @transform_4(%arg0: i32) -> (i32, i32) {
    %c0_i32 = arith.constant 0 : i32
    %c0_i32_0 = arith.constant 0 : i32
    %c0_i32_1 = arith.constant 0 : i32
    return %c0_i32, %c0_i32_0 : i32, i32
  }
  func.func @transform_5(%arg0: i32) -> (i32, i32, i32) {
    %c0_i32 = arith.constant 0 : i32
    %c0_i32_0 = arith.constant 0 : i32
    %c0_i32_1 = arith.constant 0 : i32
    return %arg0, %c0_i32, %c0_i32_0 : i32, i32, i32
  }
}

</mosaic_0001>

<bundles_post_ra>
// kernel: set_transformer_forward.1
= control target key start
LH: loop header
LB: loop body
LE: loop exit
PB: predicated region body
PF: predicated region fallthrough
CT: control target
= control target key end

     0   :  { %10 = vsyncpa [#allocation3], 0  ;;  %s4318_s0 = inlined_call_operand.vmem [shape: f32[2,8,4], index: 0, kind: input, shape index: {}]   ;;  %s4319_s1 = inlined_call_operand.hbm [shape: f32[5,32,96], index: 1, kind: input, shape index: {}]   ;;  %s4320_s2 = inlined_call_operand.hbm [shape: f32[5,32,32], index: 2, kind: input, shape index: {}]   ;;  %s4321_s3 = inlined_call_operand.vmem [shape: f32[5,128], index: 3, kind: input, shape index: {}]   ;;  %s4322_s4 = inlined_call_operand.vmem [shape: f32[41,32], index: 4, kind: input, shape index: {}]   ;;  %s4323_s5 = inlined_call_operand.vmem [shape: f32[2,8,4], index: 5, kind: output, shape index: {}]  }
   0x1   :  { %11 = vsyncpa [#allocation5], 0  ;;  %s3789_s18 = smov 0  }
   0x2 LB: > { %s3795_s19 = sadd.s32 4294967295, %s3741_s18   ;;  %p2793_p0 = scmp.ge.s32.totalorder %s3741_s18, 1  ;;  %s3741_s18 = sphi %s3789_s18, %s17_s18  }
   0x3   : > { %p158_p1 = scmp.lt.s32.totalorder %s3741_s18, 3  ;;  %s3743_s20 = smov [#allocation2]  }
   0x4   : > { %s170_s21 = sshll.u32 %s3743_s20, 4  ;;  %p4324_p3 = scmp.eq.s32.totalorder %s3795_s19, 0  ;;  %s171_s21 = int_to_ptr.vmem [resolvable:$true] %s170_s21 }
   0x5   : > { %p3799_p2 = pnand %p2793_p0, %p158_p1  ;;  %s3744_s23 = smov [#allocation4]  }
   0x6   : > { %s183_s24 = sshll.u32 %s3744_s23, 4  ;;  %s3671_s28 = scalar_lea.hbm %s4319_s1, 2560  ;;  %s3812_s24 = int_to_ptr.vmem [resolvable:$true] %s183_s24 }
   0x7   : > { %s4326_s22 = scalar_select %p3799_p2, 1, 0 }
   0x8   : > { %p3455_p4 = pneg %p3799_p2  ;;  %p3672_p6 = scmp.ne.s32.totalorder %s4319_s1, %s3671_s28 }
   0x9   : > { %p3678_p10 = scmp.lt.u32.totalorder %s3671_s28, %s4319_s1 }
   0xa   : > { %p3808_p5 = pnand %p4324_p3, %p3455_p4 }
   0xc   : > { %p3673_p7 = pneg %p3808_p5 }
   0xe   : > { %p3674_p8 = pnand %p3673_p7, %p3672_p6 }
  0x10   : > { %p3675_p9 = pneg %p3674_p8 }
  0x12   : > { %p3680_p11 = pnand %p3678_p10, %p3675_p9 }
  0x14   : > { %3683 = shalt.err (!%p3680_p11)
}
  0x15   : > { %s3684_s8 = scalar_lea.vmem %s171_s21, 2560  ;;  %p3692_p1 = scmp.lt.s32.totalorder %s171_s21, %s171_s21 }
  0x16   : > { %p3685_p12 = scmp.ne.s32.totalorder %s171_s21, %s3684_s8  ;;  %p3693_p4 = scmp.lt.s32.totalorder %s3684_s8, %s3684_s8 }
  0x18   : > { %p3687_p13 = pnand %p3685_p12, %p3673_p7  ;;  %p3694_p3 = por %p3693_p4, %p3692_p1 }
  0x1a   : > { %p3688_p0 = pneg %p3687_p13 }
  0x1c   : > { %p3695_p2 = pnand %p3694_p3, %p3688_p0 }
  0x1e   : > { %3698 = shalt.err (!%p3695_p2)
}
  0x1f   : > { %s3745_s9 = smov 128   ;;  %s3746_s10 = smov 8  }
  0x20   : > { %3458 = dma.hbm_to_vmem [thread:$0]  (!%p3808_p5), %s4319_s1, 2560, %s171_s21, [#allocation3], %s3745_s9, %s3745_s9, %s3746_s10  }
  0x21   : > { %s3699_s15 = scalar_lea.hbm %s4320_s2, 2560 }
  0x22   : > { %p3700_p6 = scmp.ne.s32.totalorder %s4320_s2, %s3699_s15  ;;  %p3706_p8 = scmp.lt.u32.totalorder %s3699_s15, %s4320_s2 }
  0x24   : > { %p3702_p2 = pnand %p3700_p6, %p3673_p7 }
  0x26   : > { %p3703_p3 = pneg %p3702_p2 }
  0x28   : > { %p3708_p9 = pnand %p3706_p8, %p3703_p3 }
  0x2a   : > { %3711 = shalt.err (!%p3708_p9)
}
  0x2b   : > { %s3712_s21 = scalar_lea.vmem %s3812_s24, 2560  ;;  %p3720_p13 = scmp.lt.s32.totalorder %s3812_s24, %s3812_s24 }
  0x2c   : > { %p3713_p10 = scmp.ne.s32.totalorder %s3812_s24, %s3712_s21  ;;  %p3721_p0 = scmp.lt.s32.totalorder %s3712_s21, %s3712_s21 }
  0x2e   : > { %p3715_p11 = pnand %p3713_p10, %p3673_p7  ;;  %p3722_p1 = por %p3721_p0, %p3720_p13 }
  0x30   : > { %p3716_p12 = pneg %p3715_p11 }
  0x32   : > { %p3723_p4 = pnand %p3722_p1, %p3716_p12 }
  0x34   : > { %3726 = shalt.err (!%p3723_p4)
}
  0x35   : > { %3461 = dma.hbm_to_vmem [thread:$0]  (!%p3808_p5), %s4320_s2, 2560, %s3812_s24, [#allocation5], %s3745_s9, %s3745_s9, %s3746_s10  }
  0x36   : > { %p4328_p6 = scmp.ne.s32.totalorder %s4326_s22, 0 }
  0x37   : > { %p4329_p2 = scmp.eq.s32.totalorder (!%p4328_p6), %s3795_s19, 0 }
  0x38   : > { %212 = sbr.rel (%p4328_p6) target bundleno = 7170 (0x1c02), region = 40 }
  0x3f   : > { %3732 = dma.done.wait (%p4329_p2), [#allocation3], 2560   ;;  %p4330_p7 = pmov %p4329_p2 }
  0x40   : > { %p4331_p3 = pmov %p4329_p2 }
  0x41   : > { %3734 = vsyncadd (%p4330_p7), [#allocation3], 4294964736 }
  0x42   : > { %3736 = dma.done.wait (%p4331_p3), [#allocation5], 2560   ;;  %p4332_p8 = pmov %p4329_p2 }
  0x43   : > { %p242_p9 = scmp.lt.s32.totalorder %s3795_s19, 1  ;;  %v3747_v0 = vmov 0.0   ;;  %vm3748_vm0 = vmmov 0   ;;  %vm267_vm1 = vcmask 1043456   ;;  %vm263_vm2 = vcmask 31744   ;;  %v258_v1 = vld [vmem:[#allocation2] sm:$0xff] }
  0x44   : > { %3738 = vsyncadd (%p4332_p8), [#allocation5], 4294964736  ;;  %3015 = vmatprep.subr.mxu0 %v3747_v0  ;;  %3017 = vmatprep.mubr.msk.f32.mxu0 %vm3748_vm0, %v3747_v0  ;;  %v259_v3 = vlaneseq  ;;  %v3891_v6 = vld [vmem:[%s4321_s3] sm:$0x1f]  ;;  %vm359_vm3 = vcmask 64512   ;;  %s3749_s6 = smov 104  }
  0x45   : > { %s4336_s19 = smov (!%p242_p9, %s3795_s19), 1  ;;  %3016 = vmatpush3.msk.msra.mxu0 %vm267_vm1, %v258_v1  ;;  %s3750_s7 = smov 120   ;;  %vm3921_vm4 = vmpackc.low %vm359_vm3, %vm359_vm3  ;;  %vm461_vm5 = vcmask 261120   ;;  %v636_v63 = vld [vmem:[#allocation4] sm:$0xff]  ;;  %v637_v1 = vld [vmem:[#allocation4 + $0x8] sm:$0xff]  ;;  %vm632_vm6 = vcmask 130048  }
  0x46   : > { %s2800_s22 = sshll.u32 %s4336_s19, 3  ;;  %v3885_v4 = vshrl.u32 %v259_v3, 7  ;;  %s3751_s8 = smov 112   ;;  %v3302_v3 = vpack.c.bf16 %v637_v1, %v636_v63  ;;  %vm634_vm7 = vcmask 195584  }
  0x47   : > { %s245_s28 = scalar_lea.vmem %s4318_s0, %s2800_s22  ;;  %s3752_s9 = smov 96  }
  0x48   : > { %v257_v2 = vld [vmem:[%s245_s28] sm:$0xff]  ;;  %v261_v5 = vsub.s32 0, %v3885_v4  ;;  %s3753_s10 = smov 64   ;;  %s3755_s11 = smov 8  }
  0x49   : > { %3018 = vmatmul.mubr.msk.f32.vlgmr.msra.gmra.mrb[0].mxu0 %vm263_vm2, %v257_v2  ;;  %v3754_v2 = vmov 0.0|0.0   ;;  %s3756_s12 = smov 32   ;;  %s3757_s13 = smov 16  }
  0x4a   : > { %v3894_v7 = vrot.slane %v3891_v6, %v261_v5  ;;  %s3758_s14 = smov 24  }
 0x11c   : > { %v337_v8 = vpop.f32.mrb[0].mxu0 }
 0x11d   : > { %v3897_v9 = vadd.f32 %v337_v8, %v3894_v7  ;;  %v3019_v10 = vpop.f32.mrb[1].mxu0  ;;  %v638_v8 = vld [vmem:[#allocation4 + $0x10] sm:$0xff] }
 0x11e   : > { %v639_v10 = vld [vmem:[#allocation4 + $0x18] sm:$0xff] }
 0x11f   : > { %348 = vrot.lane.b32.xlu1 %v3897_v9, %s3749_s6  ;;  %342 = vrot.lane.b32.xlu0 %v3897_v9, %s3750_s7 }
 0x120   : > { %3028 = vmatprep.mubr.msk.f32.mxu1 %vm359_vm3, %v3897_v9 }
 0x123   : > { %345 = vrot.lane.b32.xlu0 %v3897_v9, %s3751_s8 }
 0x191   : > { %v3907_v11 = vpop.permute.xlu0 %342  ;;  %v3912_v13 = vpop.permute.xlu1 %348 }
 0x192   : > { %v3490_v12 = vpack.i.bf16 %v3907_v11, %v3897_v9 }
 0x194   : > { %3491 = vrot.lane.b32.xlu1 %v3490_v12, %s3752_s9 }
 0x195   : > { %v3914_v14 = vpop.permute.xlu0 %345 }
 0x196   : > { %v3495_v15 = vpack.i.bf16 %v3912_v13, %v3914_v14 }
 0x198   : > { %3496 = vrot.lane.b32.xlu0 %v3495_v15, %s3752_s9 }
 0x206   : > { %v3492_v16 = vpop.permute.xlu1 %3491 }
 0x207   : > { %v3494_v17 = vunpack.i.h.bf16 %v3492_v16  ;;  %v3493_v18 = vunpack.i.l.bf16 %v3492_v16 }
 0x209   : > { %v3281_v20 = vpack.c.bf16 %v3494_v17, %v3493_v18 }
 0x20a   : > { %v3497_v21 = vpop.permute.xlu0 %3496 }
 0x20b   : > { %v3499_v22 = vunpack.i.h.bf16 %v3497_v21  ;;  %v3498_v23 = vunpack.i.l.bf16 %v3497_v21  ;;  %3283 = vmatprep.subr.msk.bf16.mxu1 %vm3921_vm4, %v3281_v20  ;;  %v721_v21 = vld [vmem:[#allocation2 + $0x28] sm:$0xff] }
 0x20c   : > { %3286 = vmatpush3.bf16.xpose.msk.msra.mxu1 %vm3921_vm4, %v3281_v20  ;;  %v720_v20 = vld [vmem:[#allocation2 + $0x20] sm:$0xff] }
 0x20d   : > { %v3287_v24 = vpack.c.bf16 %v3499_v22, %v3498_v23  ;;  %v3308_v23 = vpack.c.bf16 %v721_v21, %v720_v20 }
 0x20f   : > { %3289 = vmatprep.subr.msk.bf16.mxu1 %vm3921_vm4, %v3287_v24 }
 0x214   : > { %3292 = vmatpush3.bf16.xpose.msk.msra.mxu1 %vm3921_vm4, %v3287_v24 }
 0x215   : > { %3307 = vmatprep.subr.bf16.mxu1 %v3754_v2 }
 0x21b   : > { %3029 = vmatmul.mubr.msk.f32.vlgmr.msra.gmra.mrb[0].mxu1 %vm359_vm3, %v3907_v11 }
 0x21c   : > { %3031 = vmatprep.mubr.msk.f32.mxu1 %vm359_vm3, %v3914_v14  ;;  %3309 = vmatpush3.bf16.msra.mxu1 %v3308_v23 }
 0x21d   : > { %3310 = vmatprep.subr.bf16.mxu1 %v3754_v2 }
 0x21f   : > { %3032 = vmatmul.mubr.msk.f32.gmra.mrb[2].mxu1 %vm359_vm3, %v3912_v13 }
 0x220   : > { %3067 = vmatprep.mubr.msk.f32.mxu1 %vm3748_vm0, %v3747_v0 }
 0x2ee   : > { %v3030_v25 = vpop.f32.mrb[0].mxu1 }
 0x2ef   : > { %v442_v26 = vpop.f32.mrb[1].mxu1  ;;  %v465_v27 = vsel %vm461_vm5, %v3030_v25, -inf }
 0x2f0   : > { %466 = vmax.xlane.f32.xlu0 %v465_v27  ;;  %v462_v28 = vsel %vm461_vm5, %v442_v26, -inf }
 0x2f1   : > { %463 = vmax.xlane.f32.xlu1 %v462_v28 }
 0x2f2   : > { %v3033_v29 = vpop.f32.mrb[2].mxu1 }
 0x2f3   : > { %v452_v30 = vpop.f32.mrb[3].mxu1  ;;  %v471_v31 = vsel %vm461_vm5, %v3033_v29, -inf }
 0x2f4   : > { %v468_v32 = vsel %vm461_vm5, %v452_v30, -inf }
 0x2f5   : > { %472 = vmax.xlane.f32.xlu1 %v471_v31  ;;  %469 = vmax.xlane.f32.xlu0 %v468_v32 }
 0x306   : > { %3506 = vrot.lane.b32.xlu1 %v3495_v15, %s3753_s10 }
 0x30b   : > { %3501 = vrot.lane.b32.xlu0 %v3490_v12, %s3753_s10  ;;  %v3305_v12 = vpack.c.bf16 %v639_v10, %v638_v8 }
 0x37d   : > { %v467_v33 = vpop.xlane.xlu0 %466 }
 0x37e   : > { %v475_v34 = vsub.f32 %v3030_v25, %v467_v33  ;;  %v464_v35 = vpop.xlane.xlu1 %463 }
 0x37f   : > { %v474_v36 = vsub.f32 %v442_v26, %v464_v35 }
 0x380   : > { %v480_v37 = vmul.f32 1.442695, %v475_v34 }
 0x381   : > { %v478_v38 = vmul.f32 1.442695, %v474_v36 }
 0x382   : > { %3590 = vpow2.f32 %v480_v37  ;;  %v473_v39 = vpop.xlane.xlu1 %472  ;;  %v470_v40 = vpop.xlane.xlu0 %469 }
 0x383   : > { %3592 = vpow2.f32 %v478_v38  ;;  %v477_v41 = vsub.f32 %v3033_v29, %v473_v39  ;;  %v476_v42 = vsub.f32 %v452_v30, %v470_v40  ;;  %v722_v38 = vld [vmem:[#allocation2 + $0x30] sm:$0xff]  ;;  %v723_v39 = vld [vmem:[#allocation2 + $0x38] sm:$0xff] }
 0x384   : > { %v3311_v40 = vpack.c.bf16 %v723_v39, %v722_v38 }
 0x385   : > { %v482_v43 = vmul.f32 1.442695, %v476_v42  ;;  %v484_v44 = vmul.f32 1.442695, %v477_v41 }
 0x386   : > { %v3507_v45 = vpop.permute.xlu1 %3506  ;;  %v3502_v46 = vpop.permute.xlu0 %3501  ;;  %3312 = vmatpush3.bf16.msra.mxu1 %v3311_v40 }
 0x387   : > { %v3504_v47 = vunpack.i.h.bf16 %v3502_v46  ;;  %3594 = vpow2.f32 %v482_v43  ;;  %v3509_v48 = vunpack.i.h.bf16 %v3507_v45  ;;  %v3508_v49 = vunpack.i.l.bf16 %v3507_v45 }
 0x388   : > { %v3503_v50 = vunpack.i.l.bf16 %v3502_v46  ;;  %3596 = vpow2.f32 %v484_v44  ;;  %v726_v46 = vsub.s32 1, %v3885_v4 }
 0x389   : > { %v3297_v53 = vpack.c.bf16 %v3509_v48, %v3508_v49 }
 0x38a   : > { %v3293_v51 = vpack.c.bf16 %v3504_v47, %v3503_v50  ;;  %v3977_v47 = vrot.slane %v3891_v6, %v726_v46 }
 0x38c   : > { %v3591_v52 = vpop.eup %3590  ;;  %3294 = vmatprep.subr.bf16.mxu0 %v3293_v51 }
 0x38d   : > { %v3593_v54 = vpop.eup %3592  ;;  %3296 = vmatpush3.bf16.msra.mxu0 %v3293_v51  ;;  %v489_v55 = vsel %vm461_vm5, %v3591_v52, 0.0 }
 0x38e   : > { %3298 = vmatprep.subr.bf16.mxu0 %v3297_v53  ;;  %3042 = vmatprep.mubr.msk.f32.mxu0 %vm461_vm5, %v3593_v54  ;;  %v486_v57 = vsel %vm461_vm5, %v3593_v54, 0.0 }
 0x38f   : > { %490 = vadd.xlane.f32.xlu1 %v489_v55 }
 0x391   : > { %3300 = vmatpush3.bf16.msra.mxu0 %v3297_v53  ;;  %v3595_v56 = vpop.eup %3594 }
 0x392   : > { %v492_v58 = vsel %vm461_vm5, %v3595_v56, 0.0  ;;  %v3597_v59 = vpop.eup %3596  ;;  %3301 = vmatprep.subr.bf16.mxu0 %v3754_v2 }
 0x393   : > { %487 = vadd.xlane.f32.xlu1 %v486_v57  ;;  %493 = vadd.xlane.f32.xlu0 %v492_v58  ;;  %v495_v60 = vsel %vm461_vm5, %v3597_v59, 0.0 }
 0x394   : > { %3043 = vmatmul.mubr.msk.f32.vlgmr.msra.gmra.mrb[2].mxu0 %vm461_vm5, %v3591_v52 }
 0x395   : > { %3045 = vmatprep.mubr.msk.f32.mxu0 %vm461_vm5, %v3595_v56  ;;  %3303 = vmatpush3.bf16.msra.mxu0 %v3302_v3 }
 0x396   : > { %3304 = vmatprep.subr.bf16.mxu0 %v3754_v2 }
 0x397   : > { %496 = vadd.xlane.f32.xlu0 %v495_v60 }
 0x398   : > { %3046 = vmatmul.mubr.msk.f32.gmra.mrb[4].mxu0 %vm461_vm5, %v3597_v59 }
 0x399   : > { %3056 = vmatprep.mubr.msk.f32.mxu0 %vm3748_vm0, %v3747_v0  ;;  %3306 = vmatpush3.bf16.msra.mxu0 %v3305_v12 }
 0x41c   : > { %v491_v61 = vpop.xlane.xlu1 %490 }
 0x41d   : > { %3598 = vrcp.f32 %v491_v61 }
 0x420   : > { %v494_v62 = vpop.xlane.xlu0 %493  ;;  %v488_v31 = vpop.xlane.xlu1 %487 }
 0x421   : > { %3600 = vrcp.f32 %v494_v62 }
 0x424   : > { %v497_v5 = vpop.xlane.xlu0 %496 }
 0x425   : > { %3602 = vrcp.f32 %v497_v5 }
 0x426   : > { %3604 = vrcp.f32 %v488_v31 }
 0x427   : > { %v3599_v15 = vpop.eup %3598 }
 0x42b   : > { %v3601_v25 = vpop.eup %3600 }
 0x42f   : > { %v3603_v28 = vpop.eup %3602 }
 0x430   : > { %v3605_v32 = vpop.eup %3604 }
 0x467   : > { %v3044_v16 = vpop.f32.mrb[2].mxu0 }
 0x468   : > { %v612_v17 = vmul.f32 %v3599_v15, %v3044_v16  ;;  %v588_v18 = vpop.f32.mrb[3].mxu0 }
 0x469   : > { %v611_v33 = vmul.f32 %v3605_v32, %v588_v18 }
 0x46a   : > { %v616_v22 = vadd.f32 %v612_v17, %v3907_v11 }
 0x46b   : > { %v3047_v24 = vpop.f32.mrb[4].mxu0 }
 0x46c   : > { %620 = vrot.lane.b32.xlu0 %v616_v22, %s3755_s11  ;;  %v598_v26 = vpop.f32.mrb[5].mxu0  ;;  %v614_v29 = vmul.f32 %v3603_v28, %v3047_v24 }
 0x46d   : > { %v613_v27 = vmul.f32 %v3601_v25, %v598_v26 }
 0x46e   : > { %v618_v11 = vadd.f32 %v614_v29, %v3912_v13 }
 0x46f   : > { %v617_v30 = vadd.f32 %v613_v27, %v3914_v14  ;;  %v615_v14 = vadd.f32 %v611_v33, %v3897_v9 }
 0x470   : > { %641 = vrot.lane.b32.xlu0 %v3894_v7, %s3756_s12 }
 0x471   : > { %624 = vrot.lane.b32.xlu1 %v617_v30, %s3757_s13 }
 0x475   : > { %628 = vrot.lane.b32.xlu1 %v618_v11, %s3758_s14 }
 0x4de   : > { %v621_v34 = vpop.permute.xlu0 %620 }
 0x4df   : > { %v631_v7 = vsel %vm359_vm3, %v615_v14, %v621_v34 }
 0x4e2   : > { %v642_v41 = vpop.permute.xlu0 %641 }
 0x4e3   : > { %v625_v35 = vpop.permute.xlu1 %624 }
 0x4e4   : > { %v633_v36 = vsel %vm632_vm6, %v631_v7, %v625_v35 }
 0x4e7   : > { %v629_v37 = vpop.permute.xlu1 %628 }
 0x4e8   : > { %v635_v13 = vsel %vm634_vm7, %v633_v36, %v629_v37 }
 0x4e9   : > { %3057 = vmatmul.mubr.msk.f32.vlgmr.msra.gmra.mrb[6].mxu0 %vm461_vm5, %v635_v13 }
 0x5bc   : > { %v713_v42 = vpop.f32.mrb[6].mxu0 }
 0x5bd   : > { %v714_v43 = vadd.f32 %v713_v42, %v642_v41  ;;  %v3058_v44 = vpop.f32.mrb[7].mxu0  ;;  %v1093_v42 = vld [vmem:[#allocation4 + $0x20] sm:$0xff] }
 0x5bf   : > { %v717_v9 = vmax.f32 %v714_v43, 0.0  ;;  %v1094_v43 = vld [vmem:[#allocation4 + $0x28] sm:$0xff] }
 0x5c0   : > { %v3334_v44 = vpack.c.bf16 %v1094_v43, %v1093_v42 }
 0x5c1   : > { %v718_v45 = vadd.f32 %v717_v9, %v635_v13 }
 0x5c3   : > { %3068 = vmatmul.mubr.msk.f32.vlgmr.msra.gmra.mrb[4].mxu1 %vm461_vm5, %v718_v45 }
 0x696   : > { %v797_v48 = vpop.f32.mrb[4].mxu1 }
 0x697   : > { %v3980_v49 = vadd.f32 %v797_v48, %v3977_v47  ;;  %v3069_v50 = vpop.f32.mrb[5].mxu1  ;;  %v1095_v48 = vld [vmem:[#allocation4 + $0x30] sm:$0xff] }
 0x698   : > { %v1096_v50 = vld [vmem:[#allocation4 + $0x38] sm:$0xff] }
 0x699   : > { %805 = vrot.lane.b32.xlu0 %v3980_v49, %s3751_s8  ;;  %802 = vrot.lane.b32.xlu1 %v3980_v49, %s3750_s7 }
 0x69a   : > { %3078 = vmatprep.mubr.msk.f32.mxu0 %vm359_vm3, %v3980_v49 }
 0x69d   : > { %808 = vrot.lane.b32.xlu1 %v3980_v49, %s3749_s6 }
 0x70b   : > { %v3990_v51 = vpop.permute.xlu1 %802  ;;  %v3995_v53 = vpop.permute.xlu0 %805 }
 0x70c   : > { %v3510_v52 = vpack.i.bf16 %v3990_v51, %v3980_v49 }
 0x70e   : > { %3511 = vrot.lane.b32.xlu0 %v3510_v52, %s3752_s9 }
 0x70f   : > { %v3997_v54 = vpop.permute.xlu1 %808 }
 0x710   : > { %v3515_v55 = vpack.i.bf16 %v3997_v54, %v3995_v53 }
 0x712   : > { %3516 = vrot.lane.b32.xlu1 %v3515_v55, %s3752_s9 }
 0x780   : > { %v3512_v56 = vpop.permute.xlu0 %3511 }
 0x781   : > { %v3514_v57 = vunpack.i.h.bf16 %v3512_v56  ;;  %v3513_v58 = vunpack.i.l.bf16 %v3512_v56  ;;  %v1178_v56 = vld [vmem:[#allocation2 + $0x48] sm:$0xff] }
 0x783   : > { %v3313_v59 = vpack.c.bf16 %v3514_v57, %v3513_v58 }
 0x784   : > { %v3517_v60 = vpop.permute.xlu1 %3516 }
 0x785   : > { %v3519_v61 = vunpack.i.h.bf16 %v3517_v60  ;;  %v3518_v62 = vunpack.i.l.bf16 %v3517_v60  ;;  %3315 = vmatprep.subr.msk.bf16.mxu0 %vm3921_vm4, %v3313_v59  ;;  %v1179_v60 = vld [vmem:[#allocation2 + $0x50] sm:$0xff] }
 0x786   : > { %3318 = vmatpush3.bf16.xpose.msk.msra.mxu0 %vm3921_vm4, %v3313_v59 }
 0x787   : > { %v3319_v63 = vpack.c.bf16 %v3519_v61, %v3518_v62  ;;  %v1180_v61 = vld [vmem:[#allocation2 + $0x58] sm:$0xff] }
 0x789   : > { %3321 = vmatprep.subr.msk.bf16.mxu0 %vm3921_vm4, %v3319_v63 }
 0x78e   : > { %3324 = vmatpush3.bf16.xpose.msk.msra.mxu0 %vm3921_vm4, %v3319_v63 }
 0x78f   : > { %3339 = vmatprep.subr.bf16.mxu0 %v3754_v2 }
 0x795   : > { %3079 = vmatmul.mubr.msk.f32.vlgmr.msra.gmra.mrb[8].mxu0 %vm359_vm3, %v3990_v51 }
 0x796   : > { %3081 = vmatprep.mubr.msk.f32.mxu0 %vm359_vm3, %v3995_v53 }
 0x799   : > { %3082 = vmatmul.mubr.msk.f32.gmra.mrb[10].mxu0 %vm359_vm3, %v3997_v54 }
 0x79a   : > { %3117 = vmatprep.mubr.msk.f32.mxu0 %vm3748_vm0, %v3747_v0 }
 0x868   : > { %v3080_v1 = vpop.f32.mrb[8].mxu0 }
 0x869   : > { %v901_v3 = vpop.f32.mrb[9].mxu0  ;;  %v923_v5 = vsel %vm461_vm5, %v3080_v1, -inf }
 0x86a   : > { %924 = vmax.xlane.f32.xlu1 %v923_v5  ;;  %v920_v8 = vsel %vm461_vm5, %v901_v3, -inf }
 0x86b   : > { %921 = vmax.xlane.f32.xlu0 %v920_v8 }
 0x86c   : > { %v3083_v10 = vpop.f32.mrb[10].mxu0 }
 0x86d   : > { %v911_v12 = vpop.f32.mrb[11].mxu0  ;;  %v929_v15 = vsel %vm461_vm5, %v3083_v10, -inf }
 0x86e   : > { %v926_v16 = vsel %vm461_vm5, %v911_v12, -inf }
 0x86f   : > { %930 = vmax.xlane.f32.xlu0 %v929_v15 }
 0x873   : > { %927 = vmax.xlane.f32.xlu0 %v926_v16 }
 0x87b   : > { %3521 = vrot.lane.b32.xlu1 %v3510_v52, %s3753_s10  ;;  %v3337_v52 = vpack.c.bf16 %v1096_v50, %v1095_v48 }
 0x889   : > { %3526 = vrot.lane.b32.xlu0 %v3515_v55, %s3753_s10  ;;  %v1177_v55 = vld [vmem:[#allocation2 + $0x40] sm:$0xff] }
 0x88a   : > { %v3346_v59 = vpack.c.bf16 %v1178_v56, %v1177_v55 }
 0x8f7   : > { %v925_v17 = vpop.xlane.xlu1 %924 }
 0x8f8   : > { %v933_v18 = vsub.f32 %v3080_v1, %v925_v17  ;;  %v922_v20 = vpop.xlane.xlu0 %921  ;;  %v3349_v1 = vpack.c.bf16 %v1180_v61, %v1179_v60 }
 0x8f9   : > { %v932_v21 = vsub.f32 %v901_v3, %v922_v20  ;;  %v3530_v20 = vpack.i.bf16 %v1178_v56, %v1177_v55 }
 0x8fa   : > { %v938_v22 = vmul.f32 1.442695, %v933_v18 }
 0x8fb   : > { %v936_v23 = vmul.f32 1.442695, %v932_v21  ;;  %v3522_v24 = vpop.permute.xlu1 %3521 }
 0x8fc   : > { %3606 = vpow2.f32 %v938_v22  ;;  %v3524_v25 = vunpack.i.h.bf16 %v3522_v24  ;;  %v3523_v26 = vunpack.i.l.bf16 %v3522_v24  ;;  %v931_v27 = vpop.xlane.xlu0 %930 }
 0x8fd   : > { %3608 = vpow2.f32 %v936_v23  ;;  %v935_v28 = vsub.f32 %v3083_v10, %v931_v27 }
 0x8fe   : > { %v3325_v29 = vpack.c.bf16 %v3524_v25, %v3523_v26 }
 0x8ff   : > { %v942_v30 = vmul.f32 1.442695, %v935_v28 }
 0x900   : > { %3326 = vmatprep.subr.bf16.mxu1 %v3325_v29  ;;  %v928_v11 = vpop.xlane.xlu0 %927 }
 0x901   : > { %3610 = vpow2.f32 %v942_v30  ;;  %v934_v31 = vsub.f32 %v911_v12, %v928_v11  ;;  %3328 = vmatpush3.bf16.msra.mxu1 %v3325_v29 }
 0x903   : > { %v940_v32 = vmul.f32 1.442695, %v934_v31 }
 0x904   : > { %v3527_v33 = vpop.permute.xlu0 %3526 }
 0x905   : > { %3612 = vpow2.f32 %v940_v32  ;;  %v3529_v34 = vunpack.i.h.bf16 %v3527_v33  ;;  %v3528_v35 = vunpack.i.l.bf16 %v3527_v33 }
 0x906   : > { %v3607_v14 = vpop.eup %3606 }
 0x907   : > { %v3609_v7 = vpop.eup %3608  ;;  %v3329_v36 = vpack.c.bf16 %v3529_v34, %v3528_v35  ;;  %v947_v37 = vsel %vm461_vm5, %v3607_v14, 0.0  ;;  %v251_v34 = vld [vmem:[%s4322_s4] sm:$0xff]  ;;  %v1183_v35 = vsub.s32 2, %v3885_v4 }
 0x908   : > { %948 = vadd.xlane.f32.xlu1 %v947_v37  ;;  %3092 = vmatprep.mubr.msk.f32.mxu1 %vm461_vm5, %v3609_v7  ;;  %v944_v41 = vsel %vm461_vm5, %v3609_v7, 0.0 }
 0x909   : > { %3330 = vmatprep.subr.bf16.mxu1 %v3329_v36 }
 0x90a   : > { %3332 = vmatpush3.bf16.msra.mxu1 %v3329_v36 }
 0x90b   : > { %v3611_v13 = vpop.eup %3610  ;;  %3333 = vmatprep.subr.bf16.mxu1 %v3754_v2 }
 0x90c   : > { %v953_v38 = vsel %vm461_vm5, %v3611_v13, 0.0 }
 0x90d   : > { %954 = vadd.xlane.f32.xlu1 %v953_v38  ;;  %3093 = vmatmul.mubr.msk.f32.vlgmr.msra.gmra.mrb[6].mxu1 %vm461_vm5, %v3607_v14  ;;  %v4063_v14 = vrot.slane %v3891_v6, %v1183_v35 }
 0x90e   : > { %3335 = vmatpush3.bf16.msra.mxu1 %v3334_v44 }
 0x90f   : > { %v3613_v39 = vpop.eup %3612  ;;  %3336 = vmatprep.subr.bf16.mxu1 %v3754_v2 }
 0x910   : > { %3095 = vmatprep.mubr.msk.f32.mxu1 %vm461_vm5, %v3613_v39  ;;  %v950_v40 = vsel %vm461_vm5, %v3613_v39, 0.0 }
 0x911   : > { %951 = vadd.xlane.f32.xlu0 %v950_v40  ;;  %3096 = vmatmul.mubr.msk.f32.gmra.mrb[8].mxu1 %vm461_vm5, %v3611_v13 }
 0x912   : > { %3106 = vmatprep.mubr.msk.f32.mxu1 %vm3748_vm0, %v3747_v0  ;;  %3338 = vmatpush3.bf16.msra.mxu1 %v3337_v52 }
 0x913   : > { %3345 = vmatprep.subr.bf16.mxu1 %v3754_v2 }
 0x915   : > { %945 = vadd.xlane.f32.xlu0 %v944_v41 }
 0x995   : > { %v949_v9 = vpop.xlane.xlu1 %948 }
 0x996   : > { %3614 = vrcp.f32 %v949_v9 }
 0x99a   : > { %v955_v45 = vpop.xlane.xlu1 %954 }
 0x99b   : > { %3616 = vrcp.f32 %v955_v45 }
 0x99e   : > { %v952_v46 = vpop.xlane.xlu0 %951 }
 0x99f   : > { %3618 = vrcp.f32 %v952_v46 }
 0x9a0   : > { %v3615_v57 = vpop.eup %3614 }
 0x9a2   : > { %v946_v21 = vpop.xlane.xlu0 %945 }
 0x9a3   : > { %3620 = vrcp.f32 %v946_v21 }
 0x9a5   : > { %v3617_v5 = vpop.eup %3616 }
 0x9a9   : > { %v3619_v10 = vpop.eup %3618 }
 0x9ad   : > { %v3621_v22 = vpop.eup %3620 }
 0x9e0   : > { %v3094_v58 = vpop.f32.mrb[6].mxu1 }
 0x9e1   : > { %v1070_v62 = vmul.f32 %v3615_v57, %v3094_v58  ;;  %v1046_v63 = vpop.f32.mrb[7].mxu1 }
 0x9e2   : > { %v1069_v23 = vmul.f32 %v3621_v22, %v1046_v63 }
 0x9e3   : > { %v1074_v3 = vadd.f32 %v1070_v62, %v3990_v51  ;;  %v3535_v51 = vpack.i.bf16 %v1180_v61, %v1179_v60 }
 0x9e4   : > { %v3097_v8 = vpop.f32.mrb[8].mxu1 }
 0x9e5   : > { %v1072_v12 = vmul.f32 %v3617_v5, %v3097_v8  ;;  %1078 = vrot.lane.b32.xlu1 %v1074_v3, %s3755_s11  ;;  %v1056_v15 = vpop.f32.mrb[9].mxu1 }
 0x9e6   : > { %v1071_v16 = vmul.f32 %v3619_v10, %v1056_v15 }
 0x9e7   : > { %v1076_v17 = vadd.f32 %v1072_v12, %v3997_v54 }
 0x9e8   : > { %v1075_v18 = vadd.f32 %v1071_v16, %v3995_v53  ;;  %v1073_v53 = vadd.f32 %v1069_v23, %v3980_v49 }
 0x9e9   : > { %1086 = vrot.lane.b32.xlu1 %v1076_v17, %s3758_s14 }
 0x9ea   : > { %1082 = vrot.lane.b32.xlu0 %v1075_v18, %s3757_s13 }
 0x9ed   : > { %3531 = vrot.lane.b32.xlu1 %v3530_v20, %s3752_s9 }
 0x9ee   : > { %1098 = vrot.lane.b32.xlu0 %v3977_v47, %s3756_s12 }
 0x9f1   : > { %3536 = vrot.lane.b32.xlu1 %v3535_v51, %s3752_s9 }
 0x9f2   : > { %1202 = vrot.lane.b32.xlu0 %v4063_v14, %s3752_s9 }
 0xa57   : > { %v1079_v54 = vpop.permute.xlu1 %1078 }
 0xa58   : > { %v1089_v25 = vsel %vm359_vm3, %v1073_v53, %v1079_v54 }
 0xa5b   : > { %v1087_v24 = vpop.permute.xlu1 %1086 }
 0xa5c   : > { %v1083_v26 = vpop.permute.xlu0 %1082 }
 0xa5d   : > { %v1090_v27 = vsel %vm632_vm6, %v1089_v25, %v1083_v26 }
 0xa5e   : > { %v1091_v28 = vsel %vm634_vm7, %v1090_v27, %v1087_v24 }
 0xa5f   : > { %3107 = vmatmul.mubr.msk.f32.vlgmr.msra.gmra.mrb[10].mxu1 %vm461_vm5, %v1091_v28  ;;  %v3532_v47 = vpop.permute.xlu1 %3531 }
 0xa60   : > { %v3534_v29 = vunpack.i.h.bf16 %v3532_v47  ;;  %v3533_v30 = vunpack.i.l.bf16 %v3532_v47  ;;  %3347 = vmatpush3.bf16.msra.mxu1 %v3346_v59  ;;  %3128 = vmatprep.mubr.msk.f32.mxu1 %vm3748_vm0, %v3747_v0  ;;  %v1099_v7 = vpop.permute.xlu0 %1098 }
 0xa61   : > { %3348 = vmatprep.subr.bf16.mxu1 %v3754_v2 }
 0xa62   : > { %v3340_v49 = vpack.c.bf16 %v3534_v29, %v3533_v30 }
 0xa63   : > { %v3537_v11 = vpop.permute.xlu1 %3536 }
 0xa64   : > { %v3539_v31 = vunpack.i.h.bf16 %v3537_v11  ;;  %v3538_v32 = vunpack.i.l.bf16 %v3537_v11  ;;  %3341 = vmatpush3.bf16.msra.mxu0 %v3340_v49  ;;  %3350 = vmatpush3.bf16.msra.mxu1 %v3349_v1  ;;  %v1203_v43 = vpop.permute.xlu0 %1202 }
 0xa65   : > { %3342 = vmatprep.subr.bf16.mxu0 %v3754_v2 }
 0xa66   : > { %v3343_v33 = vpack.c.bf16 %v3539_v31, %v3538_v32 }
 0xa67   : > { %3129 = vmatmul.mubr.msk.f32.vlgmr.msra.gmra.mrb[12].mxu1 %vm461_vm5, %v251_v34 }
 0xa68   : > { %3344 = vmatpush3.bf16.msra.mxu0 %v3343_v33 }
 0xb32   : > { %v1170_v36 = vpop.f32.mrb[10].mxu1 }
 0xb33   : > { %v1171_v37 = vadd.f32 %v1170_v36, %v1099_v7  ;;  %v3108_v13 = vpop.f32.mrb[11].mxu1 }
 0xb34   : > { %v1642_v13 = vld [vmem:[#allocation4 + $0x40] sm:$0xff] }
 0xb35   : > { %v1174_v38 = vmax.f32 %v1171_v37, 0.0 }
 0xb37   : > { %v1175_v39 = vadd.f32 %v1174_v38, %v1091_v28  ;;  %v1643_v38 = vld [vmem:[#allocation4 + $0x48] sm:$0xff] }
 0xb39   : > { %3118 = vmatmul.mubr.msk.f32.vlgmr.msra.gmra.mrb[12].mxu0 %vm461_vm5, %v1175_v39  ;;  %v3372_v39 = vpack.c.bf16 %v1643_v38, %v1642_v13 }
 0xb3a   : > { %v1347_v40 = vpop.f32.mrb[12].mxu1 }
 0xb3b   : > { %v4069_v41 = vadd.f32 %v1347_v40, %v4063_v14  ;;  %v3130_v42 = vpop.f32.mrb[13].mxu1 }
 0xb3c   : > { %v1644_v42 = vld [vmem:[#allocation4 + $0x50] sm:$0xff] }
 0xb3d   : > { %3139 = vmatprep.mubr.msk.f32.mxu0 %vm359_vm3, %v4069_v41 }
 0xc0c   : > { %v1274_v44 = vpop.f32.mrb[12].mxu0 }
 0xc0d   : > { %v1275_v9 = vadd.f32 %v1274_v44, %v1203_v43  ;;  %v3119_v45 = vpop.f32.mrb[13].mxu0  ;;  %v1645_v43 = vld [vmem:[#allocation4 + $0x58] sm:$0xff] }
 0xc0e   : > { %v3375_v44 = vpack.c.bf16 %v1645_v43, %v1644_v42 }
 0xc0f   : > { %1364 = vrot.lane.b32.xlu0 %v1275_v9, %s3751_s8  ;;  %1362 = vrot.lane.b32.xlu1 %v1275_v9, %s3750_s7 }
 0xc13   : > { %1366 = vrot.lane.b32.xlu1 %v1275_v9, %s3749_s6  ;;  %1352 = vrot.lane.b32.xlu0 %v4069_v41, %s3750_s7 }
 0xc17   : > { %1358 = vrot.lane.b32.xlu0 %v4069_v41, %s3749_s6  ;;  %1355 = vrot.lane.b32.xlu1 %v4069_v41, %s3751_s8 }
 0xc81   : > { %v1363_v46 = vpop.permute.xlu1 %1362  ;;  %v1365_v50 = vpop.permute.xlu0 %1364 }
 0xc82   : > { %v3351_v48 = vpack.c.bf16 %v1363_v46, %v1275_v9  ;;  %v3540_v10 = vpack.i.bf16 %v1363_v46, %v1275_v9 }
 0xc84   : > { %3353 = vmatprep.subr.msk.bf16.mxu0 %vm3921_vm4, %v3351_v48 }
 0xc85   : > { %3356 = vmatpush3.bf16.xpose.msk.msra.mxu0 %vm3921_vm4, %v3351_v48  ;;  %v1367_v52 = vpop.permute.xlu1 %1366  ;;  %v4091_v57 = vpop.permute.xlu0 %1352 }
 0xc86   : > { %v3357_v55 = vpack.c.bf16 %v1367_v52, %v1365_v50  ;;  %v3545_v56 = vpack.i.bf16 %v1367_v52, %v1365_v50  ;;  %v1725_v50 = vld [vmem:[#allocation2 + $0x60] sm:$0xff]  ;;  %v1726_v52 = vld [vmem:[#allocation2 + $0x68] sm:$0xff] }
 0xc88   : > { %3359 = vmatprep.subr.msk.bf16.mxu0 %vm3921_vm4, %v3357_v55 }
 0xc89   : > { %v4093_v58 = vpop.permute.xlu1 %1355  ;;  %v4099_v59 = vpop.permute.xlu0 %1358 }
 0xc8d   : > { %3362 = vmatpush3.bf16.xpose.msk.msra.mxu0 %vm3921_vm4, %v3357_v55 }
 0xc8e   : > { %3377 = vmatprep.subr.bf16.mxu0 %v3754_v2 }
 0xc94   : > { %3140 = vmatmul.mubr.msk.f32.vlgmr.msra.gmra.mrb[14].mxu0 %vm359_vm3, %v4091_v57 }
 0xc95   : > { %3142 = vmatprep.mubr.msk.f32.mxu0 %vm359_vm3, %v4093_v58 }
 0xc98   : > { %3143 = vmatmul.mubr.msk.f32.gmra.mrb[16].mxu0 %vm359_vm3, %v4099_v59 }
 0xc99   : > { %3178 = vmatprep.mubr.msk.f32.mxu0 %vm3748_vm0, %v3747_v0 }
 0xd67   : > { %v3141_v60 = vpop.f32.mrb[14].mxu0 }
 0xd68   : > { %v1450_v61 = vpop.f32.mrb[15].mxu0  ;;  %v1472_v62 = vsel %vm461_vm5, %v3141_v60, -inf }
 0xd69   : > { %1473 = vmax.xlane.f32.xlu0 %v1472_v62  ;;  %v1469_v63 = vsel %vm461_vm5, %v1450_v61, -inf }
 0xd6a   : > { %1470 = vmax.xlane.f32.xlu1 %v1469_v63 }
 0xd6b   : > { %v3144_v1 = vpop.f32.mrb[16].mxu0 }
 0xd6c   : > { %v1460_v3 = vpop.f32.mrb[17].mxu0  ;;  %v1478_v5 = vsel %vm461_vm5, %v3144_v1, -inf }
 0xd6d   : > { %v1475_v8 = vsel %vm461_vm5, %v1460_v3, -inf }
 0xd6e   : > { %1479 = vmax.xlane.f32.xlu1 %v1478_v5  ;;  %1476 = vmax.xlane.f32.xlu0 %v1475_v8 }
 0xd7f   : > { %3546 = vrot.lane.b32.xlu1 %v3545_v56, %s3752_s9  ;;  %v3378_v56 = vpack.c.bf16 %v1726_v52, %v1725_v50 }
 0xd81   : > { %3379 = vmatpush3.bf16.msra.mxu0 %v3378_v56 }
 0xd82   : > { %3380 = vmatprep.subr.bf16.mxu0 %v3754_v2 }
 0xd84   : > { %3541 = vrot.lane.b32.xlu0 %v3540_v10, %s3752_s9 }
 0xdf6   : > { %v1474_v12 = vpop.xlane.xlu0 %1473 }
 0xdf7   : > { %v1482_v15 = vsub.f32 %v3141_v60, %v1474_v12  ;;  %v1471_v16 = vpop.xlane.xlu1 %1470 }
 0xdf8   : > { %v1481_v17 = vsub.f32 %v1450_v61, %v1471_v16 }
 0xdf9   : > { %v1487_v18 = vmul.f32 1.442695, %v1482_v15 }
 0xdfa   : > { %v1485_v20 = vmul.f32 1.442695, %v1481_v17 }
 0xdfb   : > { %3622 = vpow2.f32 %v1487_v18  ;;  %v1477_v51 = vpop.xlane.xlu0 %1476  ;;  %v1480_v21 = vpop.xlane.xlu1 %1479 }
 0xdfc   : > { %3624 = vpow2.f32 %v1485_v20  ;;  %v1483_v22 = vsub.f32 %v1460_v3, %v1477_v51  ;;  %v1484_v23 = vsub.f32 %v3144_v1, %v1480_v21  ;;  %v1728_v51 = vld [vmem:[#allocation2 + $0x78] sm:$0xff] }
 0xdfe   : > { %v1489_v54 = vmul.f32 1.442695, %v1483_v22  ;;  %v1491_v53 = vmul.f32 1.442695, %v1484_v23 }
 0xdff   : > { %v3542_v24 = vpop.permute.xlu0 %3541  ;;  %v3547_v25 = vpop.permute.xlu1 %3546 }
 0xe00   : > { %3626 = vpow2.f32 %v1489_v54  ;;  %v3544_v26 = vunpack.i.h.bf16 %v3542_v24  ;;  %v3543_v27 = vunpack.i.l.bf16 %v3542_v24  ;;  %v3549_v28 = vunpack.i.h.bf16 %v3547_v25 }
 0xe01   : > { %v3548_v47 = vunpack.i.l.bf16 %v3547_v25  ;;  %3628 = vpow2.f32 %v1491_v53 }
 0xe02   : > { %v3363_v29 = vpack.c.bf16 %v3544_v26, %v3543_v27 }
 0xe03   : > { %v3367_v30 = vpack.c.bf16 %v3549_v28, %v3548_v47 }
 0xe04   : > { %3364 = vmatprep.subr.bf16.mxu1 %v3363_v29 }
 0xe05   : > { %v3623_v49 = vpop.eup %3622  ;;  %3366 = vmatpush3.bf16.msra.mxu1 %v3363_v29 }
 0xe06   : > { %v3625_v11 = vpop.eup %3624  ;;  %3368 = vmatprep.subr.bf16.mxu1 %v3367_v30  ;;  %v1496_v31 = vsel %vm461_vm5, %v3623_v49, 0.0 }
 0xe07   : > { %1497 = vadd.xlane.f32.xlu1 %v1496_v31  ;;  %3153 = vmatprep.mubr.msk.f32.mxu1 %vm461_vm5, %v3625_v11  ;;  %v1493_v33 = vsel %vm461_vm5, %v3625_v11, 0.0 }
 0xe09   : > { %3370 = vmatpush3.bf16.msra.mxu1 %v3367_v30 }
 0xe0a   : > { %v3627_v32 = vpop.eup %3626  ;;  %3371 = vmatprep.subr.bf16.mxu1 %v3754_v2 }
 0xe0b   : > { %1494 = vadd.xlane.f32.xlu1 %v1493_v33  ;;  %v1499_v34 = vsel %vm461_vm5, %v3627_v32, 0.0  ;;  %v3629_v35 = vpop.eup %3628 }
 0xe0c   : > { %1500 = vadd.xlane.f32.xlu0 %v1499_v34  ;;  %3154 = vmatmul.mubr.msk.f32.vlgmr.msra.gmra.mrb[14].mxu1 %vm461_vm5, %v3623_v49  ;;  %v1502_v7 = vsel %vm461_vm5, %v3629_v35, 0.0 }
 0xe0d   : > { %3156 = vmatprep.mubr.msk.f32.mxu1 %vm461_vm5, %v3627_v32  ;;  %3373 = vmatpush3.bf16.msra.mxu1 %v3372_v39 }
 0xe0e   : > { %3374 = vmatprep.subr.bf16.mxu1 %v3754_v2 }
 0xe10   : > { %1503 = vadd.xlane.f32.xlu0 %v1502_v7  ;;  %3157 = vmatmul.mubr.msk.f32.gmra.mrb[16].mxu1 %vm461_vm5, %v3629_v35 }
 0xe11   : > { %3167 = vmatprep.mubr.msk.f32.mxu1 %vm3748_vm0, %v3747_v0  ;;  %3376 = vmatpush3.bf16.msra.mxu1 %v3375_v44 }
 0xe94   : > { %v1498_v36 = vpop.xlane.xlu1 %1497 }
 0xe95   : > { %3630 = vrcp.f32 %v1498_v36 }
 0xe98   : > { %v1495_v8 = vpop.xlane.xlu1 %1494 }
 0xe99   : > { %v1501_v37 = vpop.xlane.xlu0 %1500 }
 0xe9a   : > { %3632 = vrcp.f32 %v1501_v37 }
 0xe9d   : > { %v1504_v40 = vpop.xlane.xlu0 %1503 }
 0xe9e   : > { %3634 = vrcp.f32 %v1504_v40 }
 0xe9f   : > { %v3631_v9 = vpop.eup %3630  ;;  %3636 = vrcp.f32 %v1495_v8 }
 0xea4   : > { %v3633_v61 = vpop.eup %3632 }
 0xea8   : > { %v3635_v1 = vpop.eup %3634 }
 0xea9   : > { %v3637_v10 = vpop.eup %3636 }
 0xedf   : > { %v3155_v45 = vpop.f32.mrb[14].mxu1 }
 0xee0   : > { %v1619_v46 = vmul.f32 %v3631_v9, %v3155_v45  ;;  %v1595_v48 = vpop.f32.mrb[15].mxu1 }
 0xee1   : > { %v1618_v12 = vmul.f32 %v3637_v10, %v1595_v48 }
 0xee2   : > { %v1623_v55 = vadd.f32 %v1619_v46, %v4091_v57 }
 0xee3   : > { %v3158_v60 = vpop.f32.mrb[16].mxu1  ;;  %v1622_v17 = vadd.f32 %v1618_v12, %v4069_v41  ;;  %v1731_v41 = vsub.s32 3, %v3885_v4 }
 0xee4   : > { %1627 = vrot.lane.b32.xlu0 %v1623_v55, %s3755_s11  ;;  %v1605_v62 = vpop.f32.mrb[17].mxu1  ;;  %v1621_v3 = vmul.f32 %v3635_v1, %v3158_v60 }
 0xee5   : > { %v1620_v63 = vmul.f32 %v3633_v61, %v1605_v62  ;;  %v4140_v26 = vrot.slane %v3891_v6, %v1731_v41  ;;  %v2100_v41 = vld [vmem:[#allocation4 + $0x70] sm:$0xff] }
 0xee6   : > { %v1625_v57 = vadd.f32 %v1621_v3, %v4099_v59  ;;  %v1727_v59 = vld [vmem:[#allocation2 + $0x70] sm:$0xff] }
 0xee7   : > { %v1624_v5 = vadd.f32 %v1620_v63, %v4093_v58  ;;  %v3381_v21 = vpack.c.bf16 %v1728_v51, %v1727_v59 }
 0xee8   : > { %1646 = vrot.lane.b32.xlu0 %v4063_v14, %s3756_s12 }
 0xee9   : > { %1631 = vrot.lane.b32.xlu1 %v1624_v5, %s3757_s13  ;;  %3382 = vmatpush3.bf16.msra.mxu0 %v3381_v21 }
 0xeed   : > { %1635 = vrot.lane.b32.xlu1 %v1625_v57, %s3758_s14 }
 0xf56   : > { %v1628_v15 = vpop.permute.xlu0 %1627 }
 0xf57   : > { %v1638_v18 = vsel %vm359_vm3, %v1622_v17, %v1628_v15 }
 0xf5a   : > { %v1647_v22 = vpop.permute.xlu0 %1646 }
 0xf5b   : > { %v1632_v16 = vpop.permute.xlu1 %1631 }
 0xf5c   : > { %v1639_v58 = vsel %vm632_vm6, %v1638_v18, %v1632_v16 }
 0xf5f   : > { %v1636_v20 = vpop.permute.xlu1 %1635 }
 0xf60   : > { %v1640_v14 = vsel %vm634_vm7, %v1639_v58, %v1636_v20 }
 0xf61   : > { %3168 = vmatmul.mubr.msk.f32.vlgmr.msra.gmra.mrb[18].mxu1 %vm461_vm5, %v1640_v14 }
0x1034   : > { %v1718_v23 = vpop.f32.mrb[18].mxu1 }
0x1035   : > { %v1719_v54 = vadd.f32 %v1718_v23, %v1647_v22  ;;  %v3169_v53 = vpop.f32.mrb[19].mxu1  ;;  %v2098_v22 = vld [vmem:[#allocation4 + $0x60] sm:$0xff]  ;;  %v2099_v23 = vld [vmem:[#allocation4 + $0x68] sm:$0xff] }
0x1037   : > { %v1722_v24 = vmax.f32 %v1719_v54, 0.0  ;;  %v3404_v54 = vpack.c.bf16 %v2099_v23, %v2098_v22 }
0x1039   : > { %v1723_v25 = vadd.f32 %v1722_v24, %v1640_v14 }
0x103b   : > { %3179 = vmatmul.mubr.msk.f32.vlgmr.msra.gmra.mrb[18].mxu0 %vm461_vm5, %v1723_v25 }
0x110e   : > { %v1802_v27 = vpop.f32.mrb[18].mxu0 }
0x110f   : > { %v4143_v28 = vadd.f32 %v1802_v27, %v4140_v26  ;;  %v3180_v47 = vpop.f32.mrb[19].mxu0  ;;  %v2101_v27 = vld [vmem:[#allocation4 + $0x78] sm:$0xff] }
0x1110   : > { %v3407_v47 = vpack.c.bf16 %v2101_v27, %v2100_v41 }
0x1111   : > { %1810 = vrot.lane.b32.xlu0 %v4143_v28, %s3751_s8  ;;  %1807 = vrot.lane.b32.xlu1 %v4143_v28, %s3750_s7 }
0x1112   : > { %3189 = vmatprep.mubr.msk.f32.mxu1 %vm359_vm3, %v4143_v28 }
0x1115   : > { %1813 = vrot.lane.b32.xlu1 %v4143_v28, %s3749_s6 }
0x1183   : > { %v4153_v29 = vpop.permute.xlu1 %1807  ;;  %v4158_v30 = vpop.permute.xlu0 %1810 }
0x1184   : > { %v3550_v6 = vpack.i.bf16 %v4153_v29, %v4143_v28 }
0x1186   : > { %3551 = vrot.lane.b32.xlu0 %v3550_v6, %s3752_s9 }
0x1187   : > { %v4160_v49 = vpop.permute.xlu1 %1813 }
0x1188   : > { %v3555_v11 = vpack.i.bf16 %v4160_v49, %v4158_v30 }
0x118a   : > { %3556 = vrot.lane.b32.xlu1 %v3555_v11, %s3752_s9 }
0x11f8   : > { %v3552_v31 = vpop.permute.xlu0 %3551 }
0x11f9   : > { %v3554_v32 = vunpack.i.h.bf16 %v3552_v31  ;;  %v3553_v33 = vunpack.i.l.bf16 %v3552_v31 }
0x11fb   : > { %v3383_v34 = vpack.c.bf16 %v3554_v32, %v3553_v33 }
0x11fc   : > { %v3557_v35 = vpop.permute.xlu1 %3556 }
0x11fd   : > { %v3559_v7 = vunpack.i.h.bf16 %v3557_v35  ;;  %v3558_v36 = vunpack.i.l.bf16 %v3557_v35  ;;  %3385 = vmatprep.subr.msk.bf16.mxu1 %vm3921_vm4, %v3383_v34 }
0x11fe   : > { %3388 = vmatpush3.bf16.xpose.msk.msra.mxu1 %vm3921_vm4, %v3383_v34 }
0x11ff   : > { %v3389_v37 = vpack.c.bf16 %v3559_v7, %v3558_v36 }
0x1201   : > { %3391 = vmatprep.subr.msk.bf16.mxu1 %vm3921_vm4, %v3389_v37 }
0x1206   : > { %3394 = vmatpush3.bf16.xpose.msk.msra.mxu1 %vm3921_vm4, %v3389_v37 }
0x1207   : > { %3409 = vmatprep.subr.bf16.mxu1 %v3754_v2 }
0x120d   : > { %3190 = vmatmul.mubr.msk.f32.vlgmr.msra.gmra.mrb[20].mxu1 %vm359_vm3, %v4153_v29 }
0x120e   : > { %3192 = vmatprep.mubr.msk.f32.mxu1 %vm359_vm3, %v4158_v30 }
0x1211   : > { %3193 = vmatmul.mubr.msk.f32.gmra.mrb[22].mxu1 %vm359_vm3, %v4160_v49 }
0x1212   : > { %3228 = vmatprep.mubr.msk.f32.mxu1 %vm3748_vm0, %v3747_v0 }
0x12e0   : > { %v3191_v13 = vpop.f32.mrb[20].mxu1 }
0x12e1   : > { %v1906_v38 = vpop.f32.mrb[21].mxu1  ;;  %v1928_v39 = vsel %vm461_vm5, %v3191_v13, -inf }
0x12e2   : > { %1929 = vmax.xlane.f32.xlu1 %v1928_v39  ;;  %v1925_v40 = vsel %vm461_vm5, %v1906_v38, -inf }
0x12e3   : > { %1926 = vmax.xlane.f32.xlu0 %v1925_v40 }
0x12e4   : > { %v3194_v42 = vpop.f32.mrb[22].mxu1 }
0x12e5   : > { %v1916_v43 = vpop.f32.mrb[23].mxu1  ;;  %v1934_v44 = vsel %vm461_vm5, %v3194_v42, -inf }
0x12e6   : > { %v1931_v9 = vsel %vm461_vm5, %v1916_v43, -inf }
0x12e7   : > { %1935 = vmax.xlane.f32.xlu0 %v1934_v44 }
0x12eb   : > { %1932 = vmax.xlane.f32.xlu0 %v1931_v9 }
0x12f3   : > { %3561 = vrot.lane.b32.xlu1 %v3550_v6, %s3753_s10  ;;  %v2182_v6 = vld [vmem:[#allocation2 + $0x80] sm:$0xff] }
0x1301   : > { %3566 = vrot.lane.b32.xlu0 %v3555_v11, %s3753_s10  ;;  %v2183_v11 = vld [vmem:[#allocation2 + $0x88] sm:$0xff] }
0x1302   : > { %v3410_v33 = vpack.c.bf16 %v2183_v11, %v2182_v6 }
0x1304   : > { %3411 = vmatpush3.bf16.msra.mxu1 %v3410_v33 }
0x1305   : > { %3412 = vmatprep.subr.bf16.mxu1 %v3754_v2 }
0x136f   : > { %v1930_v45 = vpop.xlane.xlu1 %1929 }
0x1370   : > { %v1938_v46 = vsub.f32 %v3191_v13, %v1930_v45  ;;  %v1927_v48 = vpop.xlane.xlu0 %1926 }
0x1371   : > { %v1937_v50 = vsub.f32 %v1906_v38, %v1927_v48 }
0x1372   : > { %v1943_v52 = vmul.f32 1.442695, %v1938_v46 }
0x1373   : > { %v1941_v55 = vmul.f32 1.442695, %v1937_v50  ;;  %v3562_v56 = vpop.permute.xlu1 %3561 }
0x1374   : > { %3638 = vpow2.f32 %v1943_v52  ;;  %v3564_v60 = vunpack.i.h.bf16 %v3562_v56  ;;  %v3563_v61 = vunpack.i.l.bf16 %v3562_v56  ;;  %v1936_v62 = vpop.xlane.xlu0 %1935  ;;  %v2185_v56 = vld [vmem:[#allocation2 + $0x98] sm:$0xff] }
0x1375   : > { %3640 = vpow2.f32 %v1941_v55  ;;  %v1940_v63 = vsub.f32 %v3194_v42, %v1936_v62  ;;  %v2184_v55 = vld [vmem:[#allocation2 + $0x90] sm:$0xff] }
0x1376   : > { %v3395_v1 = vpack.c.bf16 %v3564_v60, %v3563_v61 }
0x1377   : > { %v1947_v3 = vmul.f32 1.442695, %v1940_v63 }
0x1378   : > { %3396 = vmatprep.subr.bf16.mxu0 %v3395_v1  ;;  %v1933_v5 = vpop.xlane.xlu0 %1932 }
0x1379   : > { %3642 = vpow2.f32 %v1947_v3  ;;  %v1939_v57 = vsub.f32 %v1916_v43, %v1933_v5  ;;  %3398 = vmatpush3.bf16.msra.mxu0 %v3395_v1  ;;  %v2188_v3 = vsub.s32 4, %v3885_v4  ;;  %v3670_v5 = vld [vmem:[%s4321_s3] sm:$0x1f] }
0x137b   : > { %v1945_v8 = vmul.f32 1.442695, %v1939_v57  ;;  %v4219_v57 = vrot.slane %v3670_v5, %v2188_v3  ;;  %v2558_v3 = vld [vmem:[#allocation4 + $0x98] sm:$0xff] }
0x137c   : > { %v3567_v10 = vpop.permute.xlu0 %3566 }
0x137d   : > { %3644 = vpow2.f32 %v1945_v8  ;;  %v3569_v12 = vunpack.i.h.bf16 %v3567_v10  ;;  %v3568_v15 = vunpack.i.l.bf16 %v3567_v10 }
0x137e   : > { %v3639_v16 = vpop.eup %3638 }
0x137f   : > { %v3641_v17 = vpop.eup %3640  ;;  %v3399_v18 = vpack.c.bf16 %v3569_v12, %v3568_v15  ;;  %v1952_v58 = vsel %vm461_vm5, %v3639_v16, 0.0 }
0x1380   : > { %1953 = vadd.xlane.f32.xlu1 %v1952_v58  ;;  %3203 = vmatprep.mubr.msk.f32.mxu0 %vm461_vm5, %v3641_v17  ;;  %v1949_v21 = vsel %vm461_vm5, %v3641_v17, 0.0 }
0x1381   : > { %3400 = vmatprep.subr.bf16.mxu0 %v3399_v18 }
0x1382   : > { %3402 = vmatpush3.bf16.msra.mxu0 %v3399_v18 }
0x1383   : > { %v3643_v20 = vpop.eup %3642  ;;  %3403 = vmatprep.subr.bf16.mxu0 %v3754_v2 }
0x1384   : > { %v1958_v14 = vsel %vm461_vm5, %v3643_v20, 0.0 }
0x1385   : > { %1959 = vadd.xlane.f32.xlu1 %v1958_v14  ;;  %3204 = vmatmul.mubr.msk.f32.vlgmr.msra.gmra.mrb[20].mxu0 %vm461_vm5, %v3639_v16 }
0x1386   : > { %3405 = vmatpush3.bf16.msra.mxu0 %v3404_v54 }
0x1387   : > { %v3645_v59 = vpop.eup %3644  ;;  %3406 = vmatprep.subr.bf16.mxu0 %v3754_v2 }
0x1388   : > { %3206 = vmatprep.mubr.msk.f32.mxu0 %vm461_vm5, %v3645_v59  ;;  %v1955_v51 = vsel %vm461_vm5, %v3645_v59, 0.0 }
0x1389   : > { %1956 = vadd.xlane.f32.xlu0 %v1955_v51  ;;  %3207 = vmatmul.mubr.msk.f32.gmra.mrb[22].mxu0 %vm461_vm5, %v3643_v20 }
0x138a   : > { %3217 = vmatprep.mubr.msk.f32.mxu0 %vm3748_vm0, %v3747_v0  ;;  %3408 = vmatpush3.bf16.msra.mxu0 %v3407_v47 }
0x138d   : > { %1950 = vadd.xlane.f32.xlu0 %v1949_v21 }
0x140d   : > { %v1954_v53 = vpop.xlane.xlu1 %1953 }
0x140e   : > { %3646 = vrcp.f32 %v1954_v53 }
0x1412   : > { %v1960_v24 = vpop.xlane.xlu1 %1959 }
0x1413   : > { %3648 = vrcp.f32 %v1960_v24 }
0x1416   : > { %v1957_v25 = vpop.xlane.xlu0 %1956 }
0x1417   : > { %3650 = vrcp.f32 %v1957_v25 }
0x1418   : > { %v3647_v31 = vpop.eup %3646 }
0x141d   : > { %v3649_v36 = vpop.eup %3648 }
0x1421   : > { %v3651_v13 = vpop.eup %3650 }
0x1458   : > { %v3205_v32 = vpop.f32.mrb[20].mxu0 }
0x1459   : > { %v2075_v34 = vmul.f32 %v3647_v31, %v3205_v32  ;;  %v2051_v35 = vpop.f32.mrb[21].mxu0 }
0x145b   : > { %v2079_v7 = vadd.f32 %v2075_v34, %v4153_v29  ;;  %v1951_v29 = vpop.xlane.xlu0 %1950 }
0x145c   : > { %v3208_v37 = vpop.f32.mrb[22].mxu0  ;;  %3652 = vrcp.f32 %v1951_v29 }
0x145d   : > { %v2077_v38 = vmul.f32 %v3649_v36, %v3208_v37  ;;  %2083 = vrot.lane.b32.xlu1 %v2079_v7, %s3755_s11  ;;  %v2061_v39 = vpop.f32.mrb[23].mxu0 }
0x145e   : > { %v2076_v40 = vmul.f32 %v3651_v13, %v2061_v39 }
0x145f   : > { %v2081_v42 = vadd.f32 %v2077_v38, %v4160_v49 }
0x1460   : > { %v2080_v43 = vadd.f32 %v2076_v40, %v4158_v30 }
0x1461   : > { %2091 = vrot.lane.b32.xlu1 %v2081_v42, %s3758_s14 }
0x1462   : > { %2087 = vrot.lane.b32.xlu0 %v2080_v43, %s3757_s13 }
0x1465   : > { %2103 = vrot.lane.b32.xlu1 %v4140_v26, %s3756_s12  ;;  %v3413_v26 = vpack.c.bf16 %v2185_v56, %v2184_v55 }
0x1466   : > { %v3653_v44 = vpop.eup %3652 }
0x1467   : > { %v2074_v9 = vmul.f32 %v3653_v44, %v2051_v35  ;;  %3414 = vmatpush3.bf16.msra.mxu1 %v3413_v26 }
0x1469   : > { %v2078_v46 = vadd.f32 %v2074_v9, %v4143_v28 }
0x14cf   : > { %v2084_v45 = vpop.permute.xlu1 %2083 }
0x14d0   : > { %v2094_v48 = vsel %vm359_vm3, %v2078_v46, %v2084_v45 }
0x14d3   : > { %v2092_v49 = vpop.permute.xlu1 %2091 }
0x14d4   : > { %v2088_v50 = vpop.permute.xlu0 %2087 }
0x14d5   : > { %v2095_v30 = vsel %vm632_vm6, %v2094_v48, %v2088_v50 }
0x14d6   : > { %v2096_v52 = vsel %vm634_vm7, %v2095_v30, %v2092_v49 }
0x14d7   : > { %3218 = vmatmul.mubr.msk.f32.vlgmr.msra.gmra.mrb[24].mxu0 %vm461_vm5, %v2096_v52  ;;  %v2104_v60 = vpop.permute.xlu1 %2103 }
0x15aa   : > { %v2175_v61 = vpop.f32.mrb[24].mxu0 }
0x15ab   : > { %v2176_v62 = vadd.f32 %v2175_v61, %v2104_v60  ;;  %v3219_v63 = vpop.f32.mrb[25].mxu0  ;;  %v2555_v61 = vld [vmem:[#allocation4 + $0x80] sm:$0xff] }
0x15ad   : > { %v2179_v1 = vmax.f32 %v2176_v62, 0.0  ;;  %v2556_v62 = vld [vmem:[#allocation4 + $0x88] sm:$0xff] }
0x15ae   : > { %v3436_v63 = vpack.c.bf16 %v2556_v62, %v2555_v61 }
0x15af   : > { %v2180_v28 = vadd.f32 %v2179_v1, %v2096_v52 }
0x15b1   : > { %3229 = vmatmul.mubr.msk.f32.vlgmr.msra.gmra.mrb[24].mxu1 %vm461_vm5, %v2180_v28  ;;  %v2557_v28 = vld [vmem:[#allocation4 + $0x90] sm:$0xff] }
0x15b2   : > { %v3439_v5 = vpack.c.bf16 %v2558_v3, %v2557_v28 }
0x1684   : > { %v2259_v8 = vpop.f32.mrb[24].mxu1 }
0x1685   : > { %v4222_v10 = vadd.f32 %v2259_v8, %v4219_v57  ;;  %v3230_v12 = vpop.f32.mrb[25].mxu1 }
0x1687   : > { %2267 = vrot.lane.b32.xlu1 %v4222_v10, %s3751_s8  ;;  %2264 = vrot.lane.b32.xlu0 %v4222_v10, %s3750_s7 }
0x1688   : > { %3239 = vmatprep.mubr.msk.f32.mxu0 %vm359_vm3, %v4222_v10 }
0x168b   : > { %2270 = vrot.lane.b32.xlu0 %v4222_v10, %s3749_s6 }
0x16f9   : > { %v4232_v4 = vpop.permute.xlu0 %2264  ;;  %v4237_v16 = vpop.permute.xlu1 %2267 }
0x16fa   : > { %v3570_v15 = vpack.i.bf16 %v4232_v4, %v4222_v10 }
0x16fc   : > { %3571 = vrot.lane.b32.xlu1 %v3570_v15, %s3752_s9 }
0x16fd   : > { %v4239_v17 = vpop.permute.xlu0 %2270 }
0x16fe   : > { %v3575_v18 = vpack.i.bf16 %v4239_v17, %v4237_v16 }
0x1700   : > { %3576 = vrot.lane.b32.xlu0 %v3575_v18, %s3752_s9  ;;  %s249_s9 = scalar_lea.vmem %s4323_s5, %s2800_s22 }
0x176e   : > { %v3572_v58 = vpop.permute.xlu1 %3571 }
0x176f   : > { %v3574_v20 = vunpack.i.h.bf16 %v3572_v58  ;;  %v3573_v14 = vunpack.i.l.bf16 %v3572_v58  ;;  %v253_v58 = vld [vmem:[%s4322_s4 + $0x10] sm:$0xff] }
0x1771   : > { %v3415_v59 = vpack.c.bf16 %v3574_v20, %v3573_v14 }
0x1772   : > { %v3577_v51 = vpop.permute.xlu0 %3576 }
0x1773   : > { %v3579_v21 = vunpack.i.h.bf16 %v3577_v51  ;;  %v3578_v22 = vunpack.i.l.bf16 %v3577_v51  ;;  %3417 = vmatprep.subr.msk.bf16.mxu0 %vm3921_vm4, %v3415_v59 }
0x1774   : > { %3420 = vmatpush3.bf16.xpose.msk.msra.mxu0 %vm3921_vm4, %v3415_v59 }
0x1775   : > { %v3421_v23 = vpack.c.bf16 %v3579_v21, %v3578_v22 }
0x1777   : > { %3423 = vmatprep.subr.msk.bf16.mxu0 %vm3921_vm4, %v3421_v23 }
0x177c   : > { %3426 = vmatpush3.bf16.xpose.msk.msra.mxu0 %vm3921_vm4, %v3421_v23 }
0x177d   : > { %3441 = vmatprep.subr.bf16.mxu0 %v3754_v2 }
0x1783   : > { %3240 = vmatmul.mubr.msk.f32.vlgmr.msra.gmra.mrb[26].mxu0 %vm359_vm3, %v4232_v4 }
0x1784   : > { %3242 = vmatprep.mubr.msk.f32.mxu0 %vm359_vm3, %v4237_v16 }
0x1787   : > { %3243 = vmatmul.mubr.msk.f32.gmra.mrb[28].mxu0 %vm359_vm3, %v4239_v17 }
0x1788   : > { %3278 = vmatprep.mubr.msk.f32.mxu0 %vm3748_vm0, %v3747_v0 }
0x1856   : > { %v3241_v54 = vpop.f32.mrb[26].mxu0 }
0x1857   : > { %v2363_v53 = vpop.f32.mrb[27].mxu0  ;;  %v2385_v24 = vsel %vm461_vm5, %v3241_v54, -inf }
0x1858   : > { %2386 = vmax.xlane.f32.xlu0 %v2385_v24  ;;  %v2382_v19 = vsel %vm461_vm5, %v2363_v53, -inf }
0x1859   : > { %2383 = vmax.xlane.f32.xlu1 %v2382_v19 }
0x185a   : > { %v3244_v25 = vpop.f32.mrb[28].mxu0 }
0x185b   : > { %v2373_v41 = vpop.f32.mrb[29].mxu0  ;;  %v2391_v27 = vsel %vm461_vm5, %v3244_v25, -inf }
0x185c   : > { %v2388_v47 = vsel %vm461_vm5, %v2373_v41, -inf }
0x185d   : > { %2392 = vmax.xlane.f32.xlu1 %v2391_v27  ;;  %2389 = vmax.xlane.f32.xlu0 %v2388_v47 }
0x186e   : > { %3586 = vrot.lane.b32.xlu1 %v3575_v18, %s3753_s10  ;;  %v252_v18 = vld [vmem:[%s4322_s4 + $0x8] sm:$0xff] }
0x186f   : > { %v3442_v14 = vpack.c.bf16 %v253_v58, %v252_v18 }
0x1871   : > { %3443 = vmatpush3.bf16.msra.mxu0 %v3442_v14 }
0x1872   : > { %3444 = vmatprep.subr.bf16.mxu0 %v3754_v2 }
0x1873   : > { %3581 = vrot.lane.b32.xlu0 %v3570_v15, %s3753_s10 }
0x18e5   : > { %v2387_v6 = vpop.xlane.xlu0 %2386 }
0x18e6   : > { %v2395_v11 = vsub.f32 %v3241_v54, %v2387_v6  ;;  %v2384_v31 = vpop.xlane.xlu1 %2383 }
0x18e7   : > { %v2394_v32 = vsub.f32 %v2363_v53, %v2384_v31 }
0x18e8   : > { %v2400_v33 = vmul.f32 1.442695, %v2395_v11  ;;  %v255_v11 = vld [vmem:[%s4322_s4 + $0x20] sm:$0xff] }
0x18e9   : > { %v2398_v34 = vmul.f32 1.442695, %v2394_v32 }
0x18ea   : > { %3654 = vpow2.f32 %v2400_v33  ;;  %v2393_v35 = vpop.xlane.xlu1 %2392  ;;  %v2390_v7 = vpop.xlane.xlu0 %2389 }
0x18eb   : > { %3656 = vpow2.f32 %v2398_v34  ;;  %v2397_v36 = vsub.f32 %v3244_v25, %v2393_v35  ;;  %v2396_v37 = vsub.f32 %v2373_v41, %v2390_v7 }
0x18ed   : > { %v2402_v13 = vmul.f32 1.442695, %v2396_v37  ;;  %v2404_v38 = vmul.f32 1.442695, %v2397_v36  ;;  %v2874_v36 = vld [vmem:[%s4322_s4 + $0x28] ss:$0 sm:$0xff] }
0x18ee   : > { %v3587_v39 = vpop.permute.xlu1 %3586  ;;  %v3582_v40 = vpop.permute.xlu0 %3581 }
0x18ef   : > { %v3584_v42 = vunpack.i.h.bf16 %v3582_v40  ;;  %3658 = vpow2.f32 %v2402_v13  ;;  %v3589_v43 = vunpack.i.h.bf16 %v3587_v39  ;;  %v3588_v29 = vunpack.i.l.bf16 %v3587_v39 }
0x18f0   : > { %v3583_v44 = vunpack.i.l.bf16 %v3582_v40  ;;  %3660 = vpow2.f32 %v2404_v38 }
0x18f1   : > { %v3431_v46 = vpack.c.bf16 %v3589_v43, %v3588_v29 }
0x18f2   : > { %v3427_v9 = vpack.c.bf16 %v3584_v42, %v3583_v44 }
0x18f4   : > { %v3655_v45 = vpop.eup %3654  ;;  %3428 = vmatprep.subr.bf16.mxu1 %v3427_v9 }
0x18f5   : > { %v3657_v48 = vpop.eup %3656  ;;  %3430 = vmatpush3.bf16.msra.mxu1 %v3427_v9  ;;  %v2409_v50 = vsel %vm461_vm5, %v3655_v45, 0.0 }
0x18f6   : > { %3432 = vmatprep.subr.bf16.mxu1 %v3431_v46  ;;  %3253 = vmatprep.mubr.msk.f32.mxu1 %vm461_vm5, %v3657_v48  ;;  %v2406_v30 = vsel %vm461_vm5, %v3657_v48, 0.0 }
0x18f7   : > { %2410 = vadd.xlane.f32.xlu1 %v2409_v50 }
0x18f9   : > { %3434 = vmatpush3.bf16.msra.mxu1 %v3431_v46  ;;  %v3659_v49 = vpop.eup %3658 }
0x18fa   : > { %3435 = vmatprep.subr.bf16.mxu1 %v3754_v2  ;;  %v2412_v52 = vsel %vm461_vm5, %v3659_v49, 0.0  ;;  %v3661_v55 = vpop.eup %3660 }
0x18fb   : > { %2407 = vadd.xlane.f32.xlu1 %v2406_v30  ;;  %2413 = vadd.xlane.f32.xlu0 %v2412_v52  ;;  %v2415_v56 = vsel %vm461_vm5, %v3661_v55, 0.0 }
0x18fc   : > { %3254 = vmatmul.mubr.msk.f32.vlgmr.msra.gmra.mrb[26].mxu1 %vm461_vm5, %v3655_v45 }
0x18fd   : > { %3256 = vmatprep.mubr.msk.f32.mxu1 %vm461_vm5, %v3659_v49  ;;  %3437 = vmatpush3.bf16.msra.mxu1 %v3436_v63 }
0x18fe   : > { %3438 = vmatprep.subr.bf16.mxu1 %v3754_v2 }
0x18ff   : > { %2416 = vadd.xlane.f32.xlu0 %v2415_v56 }
0x1900   : > { %3257 = vmatmul.mubr.msk.f32.gmra.mrb[28].mxu1 %vm461_vm5, %v3661_v55 }
0x1901   : > { %3267 = vmatprep.mubr.msk.f32.mxu1 %vm3748_vm0, %v3747_v0  ;;  %3440 = vmatpush3.bf16.msra.mxu1 %v3439_v5 }
0x1984   : > { %v2411_v26 = vpop.xlane.xlu1 %2410 }
0x1985   : > { %3662 = vrcp.f32 %v2411_v26 }
0x1988   : > { %v2414_v60 = vpop.xlane.xlu0 %2413  ;;  %v2408_v24 = vpop.xlane.xlu1 %2407 }
0x1989   : > { %3664 = vrcp.f32 %v2414_v60 }
0x198c   : > { %v2417_v1 = vpop.xlane.xlu0 %2416 }
0x198d   : > { %3666 = vrcp.f32 %v2417_v1 }
0x198e   : > { %3668 = vrcp.f32 %v2408_v24 }
0x198f   : > { %v3663_v8 = vpop.eup %3662 }
0x1993   : > { %v3665_v51 = vpop.eup %3664 }
0x1997   : > { %v3667_v23 = vpop.eup %3666 }
0x1998   : > { %v3669_v19 = vpop.eup %3668 }
0x19cf   : > { %v3255_v12 = vpop.f32.mrb[26].mxu1 }
0x19d0   : > { %v2532_v15 = vmul.f32 %v3663_v8, %v3255_v12  ;;  %v2508_v0 = vpop.f32.mrb[27].mxu1 }
0x19d1   : > { %v2531_v25 = vmul.f32 %v3669_v19, %v2508_v0 }
0x19d2   : > { %v2536_v20 = vadd.f32 %v2532_v15, %v4232_v4 }
0x19d3   : > { %v3258_v59 = vpop.f32.mrb[28].mxu1  ;;  %v2535_v2 = vadd.f32 %v2531_v25, %v4222_v10 }
0x19d4   : > { %2540 = vrot.lane.b32.xlu0 %v2536_v20, %s3755_s11  ;;  %v2518_v21 = vpop.f32.mrb[29].mxu1  ;;  %v2534_v54 = vmul.f32 %v3667_v23, %v3258_v59 }
0x19d5   : > { %v2533_v22 = vmul.f32 %v3665_v51, %v2518_v21 }
0x19d6   : > { %v2538_v4 = vadd.f32 %v2534_v54, %v4239_v17  ;;  %v254_v17 = vld [vmem:[%s4322_s4 + $0x18] sm:$0xff] }
0x19d7   : > { %v2537_v53 = vadd.f32 %v2533_v22, %v4237_v16  ;;  %v3445_v31 = vpack.c.bf16 %v255_v11, %v254_v17 }
0x19d8   : > { %2560 = vrot.lane.b32.xlu0 %v4219_v57, %s3756_s12 }
0x19d9   : > { %2544 = vrot.lane.b32.xlu1 %v2537_v53, %s3757_s13  ;;  %3446 = vmatpush3.bf16.msra.mxu0 %v3445_v31 }
0x19dd   : > { %2548 = vrot.lane.b32.xlu1 %v2538_v4, %s3758_s14 }
0x1a46   : > { %v2541_v41 = vpop.permute.xlu0 %2540 }
0x1a47   : > { %v2551_v47 = vsel %vm359_vm3, %v2535_v2, %v2541_v41 }
0x1a4a   : > { %v2561_v10 = vpop.permute.xlu0 %2560 }
0x1a4b   : > { %v2545_v27 = vpop.permute.xlu1 %2544 }
0x1a4c   : > { %v2552_v16 = vsel %vm632_vm6, %v2551_v47, %v2545_v27 }
0x1a4f   : > { %v2549_v57 = vpop.permute.xlu1 %2548 }
0x1a50   : > { %v2553_v6 = vsel %vm634_vm7, %v2552_v16, %v2549_v57 }
0x1a51   : > { %3268 = vmatmul.mubr.msk.f32.vlgmr.msra.gmra.mrb[30].mxu1 %vm461_vm5, %v2553_v6 }
0x1b24   : > { %v2632_v32 = vpop.f32.mrb[30].mxu1 }
0x1b25   : > { %v2633_v33 = vadd.f32 %v2632_v32, %v2561_v10  ;;  %v3269_v34 = vpop.f32.mrb[31].mxu1 }
0x1b27   : > { %v2636_v35 = vmax.f32 %v2633_v33, 0.0 }
0x1b29   : > { %v2637_v7 = vadd.f32 %v2636_v35, %v2553_v6 }
0x1b2b   : > { %3279 = vmatmul.mubr.msk.f32.vlgmr.msra.gmra.mrb[30].mxu0 %vm461_vm5, %v2637_v7 }
0x1bfe   : > { %v2711_v37 = vpop.f32.mrb[30].mxu0 }
0x1bff   : > { %v2712_v13 = vadd.f32 %v2874_v36, %v2711_v37  ;;  %v3280_v38 = vpop.f32.mrb[31].mxu0 }
0x1c01   : > { %2715 = vst.msk [vmem:[%s249_s9] sm:$0xff] %vm263_vm2, %v2712_v13 }
0x1c02 PF: > { %s17_s18 = sadd.s32 1, %s3741_s18  }
0x1c03   : > { %p14_p5 = scmp.ge.s32.totalorder %s17_s18, 4  }
0x1c05   :  { %16 = sbr.rel (!%p14_p5) target bundleno = 2 (0x2), region = 87 }
0x1c0c   :  { %2735 = vsyncpa [#allocation3], 1 }
0x1c0d   :  { %2737 = vsyncpa [#allocation3 + $0x1], 1 }
0x1c0e   :  { %2738 = vsyncpa [#allocation5], 1 }

</bundles_post_ra>
